<compile_context>
chip_gen: v5e
topology: v5e:2x2
jax: 0.10.0
libtpu: 0.0.40
codegen_flags: <defaults>
</compile_context>

<pallas_src>
import functools

import jax
import jax.numpy as jnp
import numpy as np
from jax.experimental import pallas as pl
from jax.experimental.pallas import tpu as pltpu


def _round_up(x: int, m: int) -> int:
    return ((x + m - 1) // m) * m


def _tpu_vmem_capacity_bytes():
    """Physical VMEM per TensorCore, or None if it cannot be queried."""
    try:
        cap = getattr(pltpu.get_tpu_info(), "vmem_capacity_bytes", None)
        return int(cap) if cap else None
    except Exception:
        return None


# ---------------------------------------------------------------------------
# Fused kernel.  Grid = (row_tiles, vocab_tiles); vocab is the reduction axis.
#   x_ref   : [H, tm]    bf16  hidden states for this row tile (rows on lanes)
#   w_ref   : [tv, H]    bf16  LM-head rows for this vocab tile
#   lbl_ref : [1, 1, tm] i32   next-token ids for this row tile
#   out_ref : [1, 1, tm] f32   log p(label | ctx), written on last vocab step
#   m/l/p   : [1, tm]    f32   running max / sum-exp / picked-logit accumulators
# ---------------------------------------------------------------------------
def _lm_head_logprob_kernel(x_ref, w_ref, lbl_ref, out_ref, m_sc, l_sc, p_sc,
                            *, v_real, tv):
    j = pl.program_id(1)

    @pl.when(j == 0)
    def _init():
        m_sc[...] = jnp.full_like(m_sc, -jnp.inf)
        l_sc[...] = jnp.zeros_like(l_sc)
        p_sc[...] = jnp.zeros_like(p_sc)

    # logits^T for this (row-tile, vocab-tile): [tv, tm], bf16 in / f32 accum.
    logits = jnp.dot(w_ref[...], x_ref[...], preferred_element_type=jnp.float32)

    local_ids = jax.lax.broadcasted_iota(jnp.int32, logits.shape, 0)   # [tv, tm]
    if v_real % tv != 0:
        # Padded vocab rows must not contribute to the logsumexp.
        logits = jnp.where(local_ids + j * tv < v_real, logits, -jnp.inf)

    # Gather the label logit: the label lands in exactly one vocab tile, so a
    # one-hot masked sum accumulated into p_sc picks it exactly once.
    rel_lbl = lbl_ref[0] - j * tv                                      # [1, tm]
    p_sc[...] += jnp.sum(
        jnp.where(local_ids == rel_lbl, logits, 0.0), axis=0, keepdims=True)

    # Online logsumexp over the vocab (sublane) axis.
    m_prev = m_sc[...]
    m_new = jnp.maximum(m_prev, jnp.max(logits, axis=0, keepdims=True))
    l_sc[...] = l_sc[...] * jnp.exp(m_prev - m_new) + jnp.sum(
        jnp.exp(logits - m_new), axis=0, keepdims=True)
    m_sc[...] = m_new

    @pl.when(j == pl.num_programs(1) - 1)
    def _finalize():
        out_ref[0] = p_sc[...] - (m_sc[...] + jnp.log(l_sc[...]))


def lm_head_logprob(x, w_head_t, labels, *, tm=512, tv=512):
    """x: [R, H], w_head_t: [V, H] (nn.Linear / tied-embedding layout, ideally
    already bf16), labels: [R] i32  ->  [R] f32 log p(label)."""
    R, H = x.shape
    V, _ = w_head_t.shape

    vmem_cap = _tpu_vmem_capacity_bytes()
    small_vmem = vmem_cap is not None and vmem_cap <= 64 * 1024 * 1024   # v7x
    if vmem_cap is None:
        vmem_limit = 64 * 1024 * 1024            # safe on every generation
    else:
        vmem_limit = min((vmem_cap * 3) // 4, 96 * 1024 * 1024)

    # ---- row tile (rows live on the LANE axis -> lane-dense accum/output) ----
    if R > 128:
        tm = _round_up(min(tm, _round_up(R, 128)), 128)
    else:
        tm = _round_up(R, 8)
    n_rt = -(-R // tm)
    if small_vmem and n_rt > 1 and n_rt % 2 == 1:
        n_rt += 1    # v7x: even row-tile count so both TensorCores stay busy
    R_pad = n_rt * tm

    # ---- vocab tile: multiple of 16 (bf16 sublanes), prefer a divisor of V ----
    tv = _round_up(min(tv, _round_up(V, 16)), 16)
    tv_div = None
    for cand in range(tv, 15, -16):
        if V % cand == 0:
            tv_div = cand
            break
    tv = tv_div if tv_div is not None else tv
    V_pad = _round_up(V, tv)
    n_vt = V_pad // tv

    # ---- operands ----
    # The LM head should already be stored in bf16 (done once at init); casting
    # here would add a full extra HBM pass over the weight every call.
    w_bf = w_head_t if w_head_t.dtype == jnp.bfloat16 else w_head_t.astype(jnp.bfloat16)
    if V_pad != V:
        # TODO(synk): pre-pad the bf16 LM head once outside the hot path.
        w_bf = jnp.pad(w_bf, ((0, V_pad - V), (0, 0)))
    x_t = jnp.pad(x.astype(jnp.float32), ((0, R_pad - R), (0, 0))
                  ).astype(jnp.bfloat16).T                               # [H, R_pad]
    lbl = jnp.pad(labels.astype(jnp.int32), (0, R_pad - R)).reshape(n_rt, 1, tm)

    kernel = functools.partial(_lm_head_logprob_kernel, v_real=V, tv=tv)

    def run(x_spec):
        return pl.pallas_call(
            kernel,
            out_shape=jax.ShapeDtypeStruct((n_rt, 1, tm), jnp.float32),
            grid=(n_rt, n_vt),
            in_specs=[
                x_spec,                                            # x^T, reused across j
                pl.BlockSpec((tv, H), lambda i, j: (j, 0)),        # streamed weight tiles
                pl.BlockSpec((1, 1, tm), lambda i, j: (i, 0, 0)),  # lane-dense labels
            ],
            out_specs=pl.BlockSpec((1, 1, tm), lambda i, j: (i, 0, 0)),  # lane-dense out
            scratch_shapes=[pltpu.VMEM((1, tm), jnp.float32)] * 3,
            compiler_params=pltpu.CompilerParams(
                dimension_semantics=("parallel", "arbitrary"),
                vmem_limit_bytes=int(vmem_limit),
            ),
        )(x_t, w_bf, lbl)

    plain_spec = pl.BlockSpec((H, tm), lambda i, j: (0, i))
    out = None
    if small_vmem:
        # v7x (64 MiB VMEM): the x tile only changes with the row index, so
        # single-buffer it and leave the VMEM to the larger weight tiles.
        try:
            buf_spec = pl.BlockSpec((H, tm), lambda i, j: (0, i),
                                    pipeline_mode=pl.Buffered(1))
            out = run(buf_spec)
        except Exception:
            out = None
    if out is None:
        out = run(plain_spec)
    return out.reshape(R_pad)[:R]


# ---------------------------------------------------------------------------
# GRPOActor.forward (num_actions given)  --  JAX glue around the kernel
# ---------------------------------------------------------------------------
def grpo_actor_forward(sequences, attention_mask, num_actions, params):
    """sequences: [B, T] i32, attention_mask: [B, T] i32 -> [B, num_actions] f32."""
    # position_ids = attention_mask.cumsum(-1) - 1 ; masked_fill(mask==0, 1)
    position_ids = jnp.cumsum(attention_mask.astype(jnp.int32), axis=-1) - 1
    position_ids = jnp.where(attention_mask == 0, 1, position_ids)

    B, T = sequences.shape
    # Only the last `num_actions` next-token predictions are returned, so only
    # those context positions are fed to the LM head / kernel.
    ctx = slice(T - 1 - num_actions, T - 1)
    # Synthetic backbone: token embedding + position embedding.
    # TODO(synk): a real transformer backbone (self-attention over
    # attention_mask) is out of scope for this kernel; only the LM-head +
    # log-softmax + label-gather hot path is kernelized.
    hidden = params["tok_emb"][sequences[:, ctx]] + params["pos_emb"][position_ids[:, ctx]]
    H = hidden.shape[-1]

    x = hidden.reshape(B * num_actions, H)
    labels = sequences[:, T - num_actions:].reshape(B * num_actions).astype(jnp.int32)

    log_probs = lm_head_logprob(x, params["w_head_t"], labels)
    return log_probs.reshape(B, num_actions)


# Pure-JAX f32 reference (full forward, then slice) for verification.
def grpo_actor_forward_ref(sequences, attention_mask, num_actions, params):
    position_ids = jnp.cumsum(attention_mask.astype(jnp.int32), axis=-1) - 1
    position_ids = jnp.where(attention_mask == 0, 1, position_ids)
    hidden = params["tok_emb"][sequences] + params["pos_emb"][position_ids]
    w_f32 = params["w_head_t"].astype(jnp.float32)
    logits = (hidden @ w_f32.T).astype(jnp.float32)
    log_probs = jax.nn.log_softmax(logits[:, :-1, :], axis=-1)
    lp = jnp.take_along_axis(log_probs, sequences[:, 1:, None], axis=-1)[..., 0]
    return lp[:, -num_actions:]


if __name__ == "__main__":
    B, T, H, V = 2, 8, 32, 512
    num_actions = 4

    key = jax.random.PRNGKey(0)
    k_tok, k_pos, k_head, k_seq = jax.random.split(key, 4)

    params = {
        "tok_emb": 0.02 * jax.random.normal(k_tok, (V, H), jnp.float32),
        "pos_emb": 0.02 * jax.random.normal(k_pos, (T, H), jnp.float32),
        # LM head stored ONCE in bf16, PyTorch nn.Linear layout [V, H] (same
        # layout as a tied embedding) -> no per-forward cast / transpose.
        "w_head_t": (0.02 * jax.random.normal(k_head, (V, H), jnp.float32)
                     ).astype(jnp.bfloat16),
    }

    sequences = jax.random.randint(k_seq, (B, T), 0, V, dtype=jnp.int32)
    # Left-padded attention mask (first sample has 2 pad positions).
    attention_mask = jnp.array(
        [[0, 0, 1, 1, 1, 1, 1, 1],
         [1, 1, 1, 1, 1, 1, 1, 1]], dtype=jnp.int32)

    out = grpo_actor_forward(sequences, attention_mask, num_actions, params)
    out = jax.block_until_ready(out)

    ref = grpo_actor_forward_ref(sequences, attention_mask, num_actions, params)
    # bf16 matmul inputs (f32 accumulation) -> slightly looser tolerance.
    np.testing.assert_allclose(np.asarray(out), np.asarray(ref), rtol=1e-3, atol=1e-3)
    assert out.shape == (B, num_actions)

    print("KERNEL_OK")
</pallas_src>

<mosaic_0001>
module attributes {stable_mosaic.version = 11 : i64} {
  func.func @_lm_head_logprob_kernel(%arg0: i32, %arg1: i32, %arg2: memref<32x8xbf16, #tpu.memory_space<vmem>>, %arg3: memref<512x32xbf16, #tpu.memory_space<vmem>>, %arg4: memref<1x1x8xi32, #tpu.memory_space<vmem>>, %arg5: memref<1x1x8xf32, #tpu.memory_space<vmem>>, %arg6: memref<1x8xf32, #tpu.memory_space<vmem>>, %arg7: memref<1x8xf32, #tpu.memory_space<vmem>>, %arg8: memref<1x8xf32, #tpu.memory_space<vmem>>) attributes {dimension_semantics = [#tpu.dimension_semantics<parallel>, #tpu.dimension_semantics<arbitrary>], iteration_bounds = array<i64: 1, 1>, scalar_prefetch = 0 : i64, scratch_operands = 3 : i64, tpu.core_type = #tpu.core_type<tc>, window_params = [{transform_indices = @transform_0, window_bounds = array<i64: 32, 8>}, {transform_indices = @transform_1, window_bounds = array<i64: 512, 32>}, {transform_indices = @transform_2, window_bounds = array<i64: 1, 1, 8>}, {transform_indices = @transform_3, window_bounds = array<i64: 1, 1, 8>}]} {
    %c0_i32 = arith.constant 0 : i32
    %0 = arith.cmpi eq, %arg1, %c0_i32 : i32
    %1 = arith.extui %0 : i1 to i32
    %c0_i32_0 = arith.constant 0 : i32
    %2 = arith.cmpi ne, %1, %c0_i32_0 : i32
    scf.if %2 {
      %cst_25 = arith.constant 0xFF800000 : f32
      %40 = vector.broadcast %cst_25 : f32 to vector<1x8xf32>
      %c0_26 = arith.constant 0 : index
      %c0_27 = arith.constant 0 : index
      %41 = vector.load %arg6[%c0_26, %c0_27] : memref<1x8xf32, #tpu.memory_space<vmem>>, vector<1x8xf32>
      tpu.vector_store %arg6[%c0_26, %c0_27], %40 {strides = array<i32>} : memref<1x8xf32, #tpu.memory_space<vmem>>, vector<1x8xf32>,
      %cst_28 = arith.constant 0.000000e+00 : f32
      %42 = vector.broadcast %cst_28 : f32 to vector<1x8xf32>
      %c0_29 = arith.constant 0 : index
      %c0_30 = arith.constant 0 : index
      %43 = vector.load %arg7[%c0_29, %c0_30] : memref<1x8xf32, #tpu.memory_space<vmem>>, vector<1x8xf32>
      tpu.vector_store %arg7[%c0_29, %c0_30], %42 {strides = array<i32>} : memref<1x8xf32, #tpu.memory_space<vmem>>, vector<1x8xf32>,
      %cst_31 = arith.constant 0.000000e+00 : f32
      %44 = vector.broadcast %cst_31 : f32 to vector<1x8xf32>
      %c0_32 = arith.constant 0 : index
      %c0_33 = arith.constant 0 : index
      %45 = vector.load %arg8[%c0_32, %c0_33] : memref<1x8xf32, #tpu.memory_space<vmem>>, vector<1x8xf32>
      tpu.vector_store %arg8[%c0_32, %c0_33], %44 {strides = array<i32>} : memref<1x8xf32, #tpu.memory_space<vmem>>, vector<1x8xf32>,
    } else {
    }
    %c0 = arith.constant 0 : index
    %c0_1 = arith.constant 0 : index
    %3 = vector.load %arg3[%c0, %c0_1] : memref<512x32xbf16, #tpu.memory_space<vmem>>, vector<512x32xbf16>
    %c0_2 = arith.constant 0 : index
    %c0_3 = arith.constant 0 : index
    %4 = vector.load %arg2[%c0_2, %c0_3] : memref<32x8xbf16, #tpu.memory_space<vmem>>, vector<32x8xbf16>
    %cst = arith.constant dense<0.000000e+00> : vector<512x8xf32>
    %5 = tpu.matmul %3, %4, %cst {dimension_numbers = #tpu.dot_dimension_numbers<[1], [0], [0], [1], [0, 0, 1, 1], [], []>} : vector<512x32xbf16>, vector<32x8xbf16>, vector<512x8xf32> -> vector<512x8xf32>
    %6 = tpu.iota {dimensions = array<i32: 0>} : vector<512x8xi32>
    %c0_4 = arith.constant 0 : index
    %c0_5 = arith.constant 0 : index
    %c0_6 = arith.constant 0 : index
    %7 = vector.load %arg4[%c0_4, %c0_5, %c0_6] : memref<1x1x8xi32, #tpu.memory_space<vmem>>, vector<1x1x8xi32>
    %8 = vector.shape_cast %7 : vector<1x1x8xi32> to vector<1x8xi32>
    %c512_i32 = arith.constant 512 : i32
    %9 = arith.muli %arg1, %c512_i32 : i32
    %10 = vector.broadcast %9 : i32 to vector<1x8xi32>
    %11 = arith.subi %8, %10 : vector<1x8xi32>
    %c0_7 = arith.constant 0 : index
    %c0_8 = arith.constant 0 : index
    %12 = vector.load %arg8[%c0_7, %c0_8] : memref<1x8xf32, #tpu.memory_space<vmem>>, vector<1x8xf32>
    %13 = vector.broadcast %11 : vector<1x8xi32> to vector<512x8xi32>
    %14 = arith.cmpi eq, %6, %13 : vector<512x8xi32>
    %cst_9 = arith.constant 0.000000e+00 : f32
    %15 = vector.broadcast %cst_9 : f32 to vector<512x8xf32>
    %16 = arith.select %14, %5, %15 : vector<512x8xi1>, vector<512x8xf32>
    %cst_10 = arith.constant dense<0.000000e+00> : vector<8xf32>
    %17 = vector.multi_reduction <add>, %16, %cst_10 [0] : vector<512x8xf32> to vector<8xf32>
    %18 = vector.shape_cast %17 : vector<8xf32> to vector<1x8xf32>
    %19 = arith.addf %12, %18 : vector<1x8xf32>
    %c0_11 = arith.constant 0 : index
    %c0_12 = arith.constant 0 : index
    %20 = vector.load %arg8[%c0_11, %c0_12] : memref<1x8xf32, #tpu.memory_space<vmem>>, vector<1x8xf32>
    tpu.vector_store %arg8[%c0_11, %c0_12], %19 {strides = array<i32>} : memref<1x8xf32, #tpu.memory_space<vmem>>, vector<1x8xf32>,
    %c0_13 = arith.constant 0 : index
    %c0_14 = arith.constant 0 : index
    %21 = vector.load %arg6[%c0_13, %c0_14] : memref<1x8xf32, #tpu.memory_space<vmem>>, vector<1x8xf32>
    %cst_15 = arith.constant dense<0xFF800000> : vector<8xf32>
    %22 = vector.multi_reduction <maximumf>, %5, %cst_15 [0] : vector<512x8xf32> to vector<8xf32>
    %23 = vector.shape_cast %22 : vector<8xf32> to vector<1x8xf32>
    %24 = arith.maximumf %21, %23 : vector<1x8xf32>
    %c0_16 = arith.constant 0 : index
    %c0_17 = arith.constant 0 : index
    %25 = vector.load %arg7[%c0_16, %c0_17] : memref<1x8xf32, #tpu.memory_space<vmem>>, vector<1x8xf32>
    %26 = arith.subf %21, %24 : vector<1x8xf32>
    %27 = math.exp %26 : vector<1x8xf32>
    %28 = arith.mulf %25, %27 : vector<1x8xf32>
    %29 = vector.broadcast %24 : vector<1x8xf32> to vector<512x8xf32>
    %30 = arith.subf %5, %29 : vector<512x8xf32>
    %31 = math.exp %30 : vector<512x8xf32>
    %cst_18 = arith.constant dense<0.000000e+00> : vector<8xf32>
    %32 = vector.multi_reduction <add>, %31, %cst_18 [0] : vector<512x8xf32> to vector<8xf32>
    %33 = vector.shape_cast %32 : vector<8xf32> to vector<1x8xf32>
    %34 = arith.addf %28, %33 : vector<1x8xf32>
    %c0_19 = arith.constant 0 : index
    %c0_20 = arith.constant 0 : index
    %35 = vector.load %arg7[%c0_19, %c0_20] : memref<1x8xf32, #tpu.memory_space<vmem>>, vector<1x8xf32>
    tpu.vector_store %arg7[%c0_19, %c0_20], %34 {strides = array<i32>} : memref<1x8xf32, #tpu.memory_space<vmem>>, vector<1x8xf32>,
    %c0_21 = arith.constant 0 : index
    %c0_22 = arith.constant 0 : index
    %36 = vector.load %arg6[%c0_21, %c0_22] : memref<1x8xf32, #tpu.memory_space<vmem>>, vector<1x8xf32>
    tpu.vector_store %arg6[%c0_21, %c0_22], %24 {strides = array<i32>} : memref<1x8xf32, #tpu.memory_space<vmem>>, vector<1x8xf32>,
    %c0_i32_23 = arith.constant 0 : i32
    %37 = arith.cmpi eq, %arg1, %c0_i32_23 : i32
    %38 = arith.extui %37 : i1 to i32
    %c0_i32_24 = arith.constant 0 : i32
    %39 = arith.cmpi ne, %38, %c0_i32_24 : i32
    scf.if %39 {
      %c0_25 = arith.constant 0 : index
      %c0_26 = arith.constant 0 : index
      %40 = vector.load %arg8[%c0_25, %c0_26] : memref<1x8xf32, #tpu.memory_space<vmem>>, vector<1x8xf32>
      %c0_27 = arith.constant 0 : index
      %c0_28 = arith.constant 0 : index
      %41 = vector.load %arg6[%c0_27, %c0_28] : memref<1x8xf32, #tpu.memory_space<vmem>>, vector<1x8xf32>
      %c0_29 = arith.constant 0 : index
      %c0_30 = arith.constant 0 : index
      %42 = vector.load %arg7[%c0_29, %c0_30] : memref<1x8xf32, #tpu.memory_space<vmem>>, vector<1x8xf32>
      %43 = math.log %42 : vector<1x8xf32>
      %44 = arith.addf %41, %43 : vector<1x8xf32>
      %45 = arith.subf %40, %44 : vector<1x8xf32>
      %c0_31 = arith.constant 0 : index
      %c0_32 = arith.constant 0 : index
      %c0_33 = arith.constant 0 : index
      %46 = vector.load %arg5[%c0_31, %c0_32, %c0_33] : memref<1x1x8xf32, #tpu.memory_space<vmem>>, vector<1x1x8xf32>
      %47 = vector.shape_cast %46 : vector<1x1x8xf32> to vector<1x8xf32>
      %48 = vector.shape_cast %45 : vector<1x8xf32> to vector<1x1x8xf32>
      tpu.vector_store %arg5[%c0_31, %c0_32, %c0_33], %48 {strides = array<i32>} : memref<1x1x8xf32, #tpu.memory_space<vmem>>, vector<1x1x8xf32>,
    } else {
    }
    return
  }
  func.func @transform_0(%arg0: i32, %arg1: i32) -> (i32, i32) {
    %c0_i32 = arith.constant 0 : i32
    %c0_i32_0 = arith.constant 0 : i32
    return %c0_i32, %arg0 : i32, i32
  }
  func.func @transform_1(%arg0: i32, %arg1: i32) -> (i32, i32) {
    %c0_i32 = arith.constant 0 : i32
    %c0_i32_0 = arith.constant 0 : i32
    return %arg1, %c0_i32 : i32, i32
  }
  func.func @transform_2(%arg0: i32, %arg1: i32) -> (i32, i32, i32) {
    %c0_i32 = arith.constant 0 : i32
    %c0_i32_0 = arith.constant 0 : i32
    %c0_i32_1 = arith.constant 0 : i32
    return %arg0, %c0_i32, %c0_i32_0 : i32, i32, i32
  }
  func.func @transform_3(%arg0: i32, %arg1: i32) -> (i32, i32, i32) {
    %c0_i32 = arith.constant 0 : i32
    %c0_i32_0 = arith.constant 0 : i32
    %c0_i32_1 = arith.constant 0 : i32
    return %arg0, %c0_i32, %c0_i32_0 : i32, i32, i32
  }
}

</mosaic_0001>

<bundles_post_ra>
// kernel: tpu_custom_call.1
= control target key start
LH: loop header
LB: loop body
LE: loop exit
PB: predicated region body
PF: predicated region fallthrough
CT: control target
= control target key end

     0   :  { %s2663_s0 = inlined_call_operand.vmem [shape: bf16[32,8], index: 0, kind: input, shape index: {}]   ;;  %s2664_s1 = inlined_call_operand.vmem [shape: bf16[512,32], index: 1, kind: input, shape index: {}]   ;;  %s2665_s2 = inlined_call_operand.vmem [shape: s32[1,1,8], index: 2, kind: input, shape index: {}]   ;;  %s2666_s3 = inlined_call_operand.hbm [shape: f32[1,1,8], index: 3, kind: output, shape index: {}]  }
   0x1   :  { %v1565_v0 = vld [vmem:[%s2663_s0 + $0x8] sm:$0xff]  ;;  %v1564_v1 = vld [vmem:[%s2663_s0] sm:$0xff] }
   0x2   :  { %367 = vmatpush.bf16.msra.mxu0 %v1565_v0  ;;  %1566 = vmatpush.bf16.msra.mxu1 %v1565_v0 }
   0x3   :  { %1567 = vmatpush.bf16.msra.mxu2 %v1565_v0  ;;  %1568 = vmatpush.bf16.msra.mxu3 %v1565_v0 }
   0x4   :  { %8 = vsyncpa [#allocation6], 0  ;;  %v1532_v2 = vld [vmem:[%s2664_s1] sm:$0xff]  ;;  %vm264_vm0 = vcmask 261120   ;;  %v1533_v6 = vld [vmem:[%s2664_s1 + $0x8] sm:$0xff]  ;;  %vm729_vm1 = vcmask 64512  }
   0x5   :  { %v1540_v3 = vld [vmem:[%s2664_s1 + $0x40] sm:$0xff]  ;;  %v1541_v7 = vld [vmem:[%s2664_s1 + $0x48] sm:$0xff]  ;;  %v1534_v10 = vld [vmem:[%s2664_s1 + $0x10] sm:$0xff]  ;;  %s1355_s27 = sshll.u32 %s2666_s3, 4  ;;  %s1356_s27 = int_to_ptr.hbm [resolvable:$true] %s1355_s27 }
   0x6   :  { %368 = vmatpush.bf16.msra.mxu0 %v1564_v1  ;;  %1569 = vmatpush.bf16.msra.mxu1 %v1564_v1  ;;  %v1548_v4 = vld [vmem:[%s2664_s1 + $0x80] sm:$0xff]  ;;  %v1549_v8 = vld [vmem:[%s2664_s1 + $0x88] sm:$0xff]  ;;  %v1542_v11 = vld [vmem:[%s2664_s1 + $0x50] sm:$0xff] }
   0x7   :  { %v1556_v5 = vld [vmem:[%s2664_s1 + $0xc0] sm:$0xff]  ;;  %1570 = vmatpush.bf16.msra.mxu2 %v1564_v1  ;;  %1571 = vmatpush.bf16.msra.mxu3 %v1564_v1  ;;  %v1557_v9 = vld [vmem:[%s2664_s1 + $0xc8] sm:$0xff]  ;;  %v1550_v12 = vld [vmem:[%s2664_s1 + $0x90] sm:$0xff] }
   0x8   :  { %v1558_v13 = vld [vmem:[%s2664_s1 + $0xd0] sm:$0xff]  ;;  %v1535_v14 = vld [vmem:[%s2664_s1 + $0x18] sm:$0xff]  ;;  %v1536_v18 = vld [vmem:[%s2664_s1 + $0x20] sm:$0xff] }
   0x9   :  { %1500 = vmatmul.msk.bf16.vlgmr.msra.gmra.mxu0 %vm264_vm0, %v1532_v2  ;;  %1508 = vmatmul.msk.bf16.vlgmr.msra.gmra.mxu1 %vm264_vm0, %v1540_v3  ;;  %v1543_v15 = vld [vmem:[%s2664_s1 + $0x58] sm:$0xff]  ;;  %v1544_v19 = vld [vmem:[%s2664_s1 + $0x60] sm:$0xff]  ;;  %v1537_v22 = vld [vmem:[%s2664_s1 + $0x28] sm:$0xff] }
   0xa   :  { %1516 = vmatmul.msk.bf16.vlgmr.msra.gmra.mxu2 %vm264_vm0, %v1548_v4  ;;  %1524 = vmatmul.msk.bf16.vlgmr.msra.gmra.mxu3 %vm264_vm0, %v1556_v5  ;;  %v1551_v16 = vld [vmem:[%s2664_s1 + $0x98] sm:$0xff]  ;;  %v1552_v20 = vld [vmem:[%s2664_s1 + $0xa0] sm:$0xff]  ;;  %v1545_v23 = vld [vmem:[%s2664_s1 + $0x68] sm:$0xff] }
   0xb   :  { %v1559_v17 = vld [vmem:[%s2664_s1 + $0xd8] sm:$0xff]  ;;  %v1560_v21 = vld [vmem:[%s2664_s1 + $0xe0] sm:$0xff]  ;;  %v1553_v24 = vld [vmem:[%s2664_s1 + $0xa8] sm:$0xff] }
   0xc   :  { %v1561_v25 = vld [vmem:[%s2664_s1 + $0xe8] sm:$0xff]  ;;  %v1538_v26 = vld [vmem:[%s2664_s1 + $0x30] sm:$0xff]  ;;  %v1539_v30 = vld [vmem:[%s2664_s1 + $0x38] sm:$0xff] }
   0xd   :  { %v1546_v27 = vld [vmem:[%s2664_s1 + $0x70] sm:$0xff]  ;;  %v1547_v31 = vld [vmem:[%s2664_s1 + $0x78] sm:$0xff] }
   0xe   :  { %v1554_v28 = vld [vmem:[%s2664_s1 + $0xb0] sm:$0xff]  ;;  %v1555_v32 = vld [vmem:[%s2664_s1 + $0xb8] sm:$0xff] }
   0xf   :  { %v1562_v29 = vld [vmem:[%s2664_s1 + $0xf0] sm:$0xff]  ;;  %v1563_v33 = vld [vmem:[%s2664_s1 + $0xf8] sm:$0xff] }
  0x19   :  { %1501 = vmatmul.msk.bf16.gmra.mxu0 %vm264_vm0, %v1533_v6  ;;  %1509 = vmatmul.msk.bf16.gmra.mxu1 %vm264_vm0, %v1541_v7 }
  0x1a   :  { %1517 = vmatmul.msk.bf16.gmra.mxu2 %vm264_vm0, %v1549_v8  ;;  %1525 = vmatmul.msk.bf16.gmra.mxu3 %vm264_vm0, %v1557_v9 }
  0x29   :  { %1502 = vmatmul.msk.bf16.gmra.mxu0 %vm264_vm0, %v1534_v10  ;;  %1510 = vmatmul.msk.bf16.gmra.mxu1 %vm264_vm0, %v1542_v11 }
  0x2a   :  { %1518 = vmatmul.msk.bf16.gmra.mxu2 %vm264_vm0, %v1550_v12  ;;  %1526 = vmatmul.msk.bf16.gmra.mxu3 %vm264_vm0, %v1558_v13 }
  0x39   :  { %1503 = vmatmul.msk.bf16.gmra.mxu0 %vm264_vm0, %v1535_v14  ;;  %1511 = vmatmul.msk.bf16.gmra.mxu1 %vm264_vm0, %v1543_v15 }
  0x3a   :  { %1519 = vmatmul.msk.bf16.gmra.mxu2 %vm264_vm0, %v1551_v16  ;;  %1527 = vmatmul.msk.bf16.gmra.mxu3 %vm264_vm0, %v1559_v17 }
  0x49   :  { %1504 = vmatmul.msk.bf16.gmra.mxu0 %vm264_vm0, %v1536_v18  ;;  %1512 = vmatmul.msk.bf16.gmra.mxu1 %vm264_vm0, %v1544_v19 }
  0x4a   :  { %1520 = vmatmul.msk.bf16.gmra.mxu2 %vm264_vm0, %v1552_v20  ;;  %1528 = vmatmul.msk.bf16.gmra.mxu3 %vm264_vm0, %v1560_v21 }
  0x59   :  { %1505 = vmatmul.msk.bf16.gmra.mxu0 %vm264_vm0, %v1537_v22  ;;  %1513 = vmatmul.msk.bf16.gmra.mxu1 %vm264_vm0, %v1545_v23 }
  0x5a   :  { %1521 = vmatmul.msk.bf16.gmra.mxu2 %vm264_vm0, %v1553_v24  ;;  %1529 = vmatmul.msk.bf16.gmra.mxu3 %vm264_vm0, %v1561_v25 }
  0x69   :  { %1506 = vmatmul.msk.bf16.gmra.mxu0 %vm264_vm0, %v1538_v26  ;;  %1514 = vmatmul.msk.bf16.gmra.mxu1 %vm264_vm0, %v1546_v27 }
  0x6a   :  { %1522 = vmatmul.msk.bf16.gmra.mxu2 %vm264_vm0, %v1554_v28  ;;  %1530 = vmatmul.msk.bf16.gmra.mxu3 %vm264_vm0, %v1562_v29 }
  0x79   :  { %1507 = vmatmul.msk.bf16.gmra.mxu0 %vm264_vm0, %v1539_v30  ;;  %1515 = vmatmul.msk.bf16.gmra.mxu1 %vm264_vm0, %v1547_v31 }
  0x7a   :  { %1523 = vmatmul.msk.bf16.gmra.mxu2 %vm264_vm0, %v1555_v32  ;;  %1531 = vmatmul.msk.bf16.gmra.mxu3 %vm264_vm0, %v1563_v33  ;;  %vm20_vm0 = vcmask 57344  }
  0x86   :  { %v1891_v34 = vpop.f32.mrf.mxu0  ;;  %v1893_v35 = vpop.f32.mrf.mxu1 }
  0x87   :  { %2703 = vst [vmem:[#allocation8_spill] sm:$0xff] %v1893_v35  ;;  %v867_v36 = vsel %vm729_vm1, %v1891_v34, -inf  ;;  %v895_v37 = vsel %vm729_vm1, %v1893_v35, -inf }
  0x88   :  { %v872_v40 = vmax.f32 %v867_v36, %v895_v37 }
  0x8d   :  { %v1899_v38 = vpop.f32.mrf.mxu2  ;;  %v1901_v39 = vpop.f32.mrf.mxu3 }
  0x8e   :  { %2704 = vst [vmem:[#allocation9_spill] sm:$0xff] %v1901_v39  ;;  %v1903_v41 = vpop.f32.mrf.mxu0  ;;  %v1905_v42 = vpop.f32.mrf.mxu1  ;;  %v927_v47 = vsel %vm729_vm1, %v1899_v38, -inf  ;;  %v959_v59 = vsel %vm729_vm1, %v1901_v39, -inf }
  0x8f   :  { %v868_v43 = vsel %vm729_vm1, %v1903_v41, -inf  ;;  %v897_v45 = vsel %vm729_vm1, %v1905_v42, -inf }
  0x90   :  { %v874_v44 = vmax.f32 %v868_v43, %v872_v40 }
  0x92   :  { %v876_v46 = vmax.f32 %v897_v45, %v874_v44 }
  0x94   :  { %v878_v50 = vmax.f32 %v927_v47, %v876_v46 }
  0x95   :  { %v1913_v48 = vpop.f32.mrf.mxu2  ;;  %v1915_v49 = vpop.f32.mrf.mxu3 }
  0x96   :  { %2705 = vst [vmem:[#allocation10_spill] sm:$0xff] %v1915_v49  ;;  %v1917_v51 = vpop.f32.mrf.mxu0  ;;  %v1919_v52 = vpop.f32.mrf.mxu1  ;;  %v929_v57 = vsel %vm729_vm1, %v1913_v48, -inf  ;;  %v961_v7 = vsel %vm729_vm1, %v1915_v49, -inf }
  0x97   :  { %v869_v53 = vsel %vm729_vm1, %v1917_v51, -inf  ;;  %v899_v54 = vsel %vm729_vm1, %v1919_v52, -inf }
  0x98   :  { %v880_v55 = vmax.f32 %v869_v53, %v878_v50 }
  0x9a   :  { %v882_v56 = vmax.f32 %v899_v54, %v880_v55 }
  0x9c   :  { %v884_v58 = vmax.f32 %v929_v57, %v882_v56 }
  0x9d   :  { %v1929_v60 = vpop.f32.mrf.mxu2  ;;  %v1931_v61 = vpop.f32.mrf.mxu3 }
  0x9e   :  { %2706 = vst [vmem:[#allocation11_spill] sm:$0xff] %v1931_v61  ;;  %v886_v62 = vmax.f32 %v959_v59, %v884_v58  ;;  %v1933_v63 = vpop.f32.mrf.mxu0  ;;  %v1935_v0 = vpop.f32.mrf.mxu1  ;;  %v931_v5 = vsel %vm729_vm1, %v1929_v60, -inf  ;;  %v963_v19 = vsel %vm729_vm1, %v1931_v61, -inf }
  0x9f   :  { %2707 = vst [vmem:[#allocation12_spill] sm:$0xff] %v1935_v0  ;;  %v870_v1 = vsel %vm729_vm1, %v1933_v63, -inf  ;;  %v901_v3 = vsel %vm729_vm1, %v1935_v0, -inf }
  0xa0   :  { %v888_v2 = vmax.f32 %v870_v1, %v886_v62 }
  0xa2   :  { %v896_v4 = vmax.f32 %v888_v2, %v901_v3 }
  0xa4   :  { %v904_v6 = vmax.f32 %v896_v4, %v931_v5 }
  0xa5   :  { %v1945_v8 = vpop.f32.mrf.mxu2  ;;  %v1947_v9 = vpop.f32.mrf.mxu3 }
  0xa6   :  { %2708 = vst [vmem:[#allocation13_spill] sm:$0xff] %v1947_v9  ;;  %v912_v10 = vmax.f32 %v904_v6, %v961_v7  ;;  %v1949_v11 = vpop.f32.mrf.mxu0  ;;  %v1951_v12 = vpop.f32.mrf.mxu1  ;;  %v933_v17 = vsel %vm729_vm1, %v1945_v8, -inf  ;;  %v965_v31 = vsel %vm729_vm1, %v1947_v9, -inf }
  0xa7   :  { %2709 = vst [vmem:[#allocation14_spill] sm:$0xff] %v1949_v11  ;;  %v871_v13 = vsel %vm729_vm1, %v1949_v11, -inf  ;;  %v903_v14 = vsel %vm729_vm1, %v1951_v12, -inf }
  0xa8   :  { %v920_v15 = vmax.f32 %v912_v10, %v871_v13 }
  0xaa   :  { %v928_v16 = vmax.f32 %v920_v15, %v903_v14 }
  0xac   :  { %v890_v18 = vmax.f32 %v933_v17, %v928_v16 }
  0xad   :  { %v1961_v20 = vpop.f32.mrf.mxu2  ;;  %v1963_v21 = vpop.f32.mrf.mxu3 }
  0xae   :  { %2710 = vst [vmem:[#allocation15_spill] sm:$0xff] %v1963_v21  ;;  %v898_v22 = vmax.f32 %v890_v18, %v963_v19  ;;  %v1965_v23 = vpop.f32.mrf.mxu0  ;;  %v1967_v24 = vpop.f32.mrf.mxu1  ;;  %v935_v29 = vsel %vm729_vm1, %v1961_v20, -inf  ;;  %v967_v53 = vsel %vm729_vm1, %v1963_v21, -inf }
  0xaf   :  { %2711 = vst [vmem:[#allocation16_spill] sm:$0xff] %v1965_v23  ;;  %v873_v25 = vsel %vm729_vm1, %v1965_v23, -inf  ;;  %v905_v27 = vsel %vm729_vm1, %v1967_v24, -inf }
  0xb0   :  { %2712 = vst [vmem:[#allocation17_spill] sm:$0xff] %v1967_v24  ;;  %v906_v26 = vmax.f32 %v898_v22, %v873_v25 }
  0xb2   :  { %v914_v28 = vmax.f32 %v906_v26, %v905_v27 }
  0xb4   :  { %v922_v30 = vmax.f32 %v914_v28, %v935_v29 }
  0xb5   :  { %v1977_v32 = vpop.f32.mrf.mxu2  ;;  %v1979_v33 = vpop.f32.mrf.mxu3 }
  0xb6   :  { %2713 = vst [vmem:[#allocation18_spill] sm:$0xff] %v1979_v33  ;;  %v930_v36 = vmax.f32 %v922_v30, %v965_v31  ;;  %v1981_v37 = vpop.f32.mrf.mxu0  ;;  %v1983_v40 = vpop.f32.mrf.mxu1  ;;  %v937_v47 = vsel %vm729_vm1, %v1977_v32, -inf  ;;  %v969_v5 = vsel %vm729_vm1, %v1979_v33, -inf  ;;  %v530_v31 = vlaneseq }
  0xb7   :  { %2714 = vst [vmem:[#allocation19_spill] sm:$0xff] %v1981_v37  ;;  %v875_v43 = vsel %vm729_vm1, %v1981_v37, -inf  ;;  %v907_v44 = vsel %vm729_vm1, %v1983_v40, -inf }
  0xb8   :  { %v936_v45 = vmax.f32 %v875_v43, %v930_v36 }
  0xba   :  { %v944_v46 = vmax.f32 %v936_v45, %v907_v44 }
  0xbc   :  { %v952_v50 = vmax.f32 %v944_v46, %v937_v47  ;;  %v2037_v46 = vshrl.u32 %v530_v31, 7 }
  0xbd   :  { %v1993_v54 = vpop.f32.mrf.mxu2  ;;  %v1995_v55 = vpop.f32.mrf.mxu3 }
  0xbe   :  { %2715 = vst [vmem:[#allocation20_spill] sm:$0xff] %v1995_v55  ;;  %v960_v56 = vmax.f32 %v952_v50, %v967_v53  ;;  %v1997_v57 = vpop.f32.mrf.mxu0  ;;  %v1999_v58 = vpop.f32.mrf.mxu1  ;;  %v939_v3 = vsel %vm729_vm1, %v1993_v54, -inf  ;;  %v971_v25 = vsel %vm729_vm1, %v1995_v55, -inf  ;;  %v532_v53 = vadd.s32 8, %v2037_v46 }
  0xbf   :  { %2716 = vst [vmem:[#allocation21_spill] sm:$0xff] %v1997_v57  ;;  %v877_v59 = vsel %vm729_vm1, %v1997_v57, -inf  ;;  %v909_v1 = vsel %vm729_vm1, %v1999_v58, -inf }
  0xc0   :  { %v892_v62 = vmax.f32 %v877_v59, %v960_v56 }
  0xc2   :  { %v900_v2 = vmax.f32 %v892_v62, %v909_v1 }
  0xc4   :  { %v908_v4 = vmax.f32 %v900_v2, %v939_v3 }
  0xc5   :  { %v2009_v6 = vpop.f32.mrf.mxu2  ;;  %v2011_v7 = vpop.f32.mrf.mxu3 }
  0xc6   :  { %2717 = vst [vmem:[#allocation22_spill] sm:$0xff] %v2011_v7  ;;  %v916_v10 = vmax.f32 %v908_v4, %v969_v5  ;;  %v2013_v13 = vpop.f32.mrf.mxu0  ;;  %v2015_v14 = vpop.f32.mrf.mxu1  ;;  %v941_v19 = vsel %vm729_vm1, %v2009_v6, -inf  ;;  %v973_v56 = vsel %vm729_vm1, %v2011_v7, -inf  ;;  %v2055_v4 = vld [vmem:[%s2665_s2] ss:$0 sm:$0xff]  ;;  %v533_v5 = vadd.s32 16, %v2037_v46 }
  0xc7   :  { %2718 = vst [vmem:[#allocation23_spill] sm:$0xff] %v2013_v13  ;;  %v879_v15 = vsel %vm729_vm1, %v2013_v13, -inf  ;;  %v911_v16 = vsel %vm729_vm1, %v2015_v14, -inf  ;;  %vm602_vm2 = vcmp.eq.s32.totalorder %v532_v53, %v2055_v4  ;;  %vm601_vm3 = vcmp.eq.s32.totalorder %v2037_v46, %v2055_v4  ;;  %s1736_s2 = smov [#allocation5]  }
  0xc8   :  { %2719 = vst [vmem:[#allocation24_spill] sm:$0xff] %v2015_v14  ;;  %v924_v17 = vmax.f32 %v916_v10, %v879_v15  ;;  %vm603_vm4 = vcmp.eq.s32.totalorder %v533_v5, %v2055_v4  ;;  %s1353_s24 = sshll.u32 %s1736_s2, 4  ;;  %s1354_s24 = int_to_ptr.vmem [resolvable:$true] %s1353_s24 }
  0xca   :  { %v932_v18 = vmax.f32 %v924_v17, %v911_v16  ;;  %v534_v17 = vadd.s32 24, %v2037_v46 }
  0xcc   :  { %v938_v22 = vmax.f32 %v941_v19, %v932_v18  ;;  %vm604_vm5 = vcmp.eq.s32.totalorder %v534_v17, %v2055_v4 }
  0xcd   :  { %v2025_v26 = vpop.f32.mrf.mxu2  ;;  %v2027_v27 = vpop.f32.mrf.mxu3 }
  0xce   :  { %2720 = vst [vmem:[#allocation25_spill] sm:$0xff] %v2027_v27  ;;  %v946_v28 = vmax.f32 %v938_v22, %v971_v25  ;;  %v2029_v29 = vpop.f32.mrf.mxu0  ;;  %v2031_v30 = vpop.f32.mrf.mxu1  ;;  %v943_v47 = vsel %vm729_vm1, %v2025_v26, -inf  ;;  %v666_v22 = vsel %vm602_vm2, %v1903_v41, 0.0  ;;  %v535_v25 = vadd.s32 32, %v2037_v46 }
  0xcf   :  { %2721 = vst [vmem:[#allocation26_spill] sm:$0xff] %v2029_v29  ;;  %v881_v36 = vsel %vm729_vm1, %v2029_v29, -inf  ;;  %v913_v44 = vsel %vm729_vm1, %v2031_v30, -inf  ;;  %v975_v31 = vsel %vm729_vm1, %v2027_v27, -inf }
  0xd0   :  { %v954_v43 = vmax.f32 %v946_v28, %v881_v36  ;;  %vm605_vm6 = vcmp.eq.s32.totalorder %v535_v25, %v2055_v4 }
  0xd1   :  { %v669_v25 = vsel %vm605_vm6, %v1949_v11, 0.0 }
  0xd2   :  { %v962_v45 = vmax.f32 %v954_v43, %v913_v44  ;;  %v665_v44 = vsel %vm601_vm3, %v1891_v34, 0.0 }
  0xd3   :  { %v730_v17 = vsel %vm729_vm1, %v665_v44, 0.0 }
  0xd4   :  { %v968_v50 = vmax.f32 %v943_v47, %v962_v45  ;;  %v667_v45 = vsel %vm603_vm4, %v1917_v51, 0.0  ;;  %v536_v47 = vadd.s32 40, %v2037_v46 }
  0xd5   :  { %v2044_v59 = vpop.f32.mrf.mxu2  ;;  %v2046_v62 = vpop.f32.mrf.mxu3 }
  0xd6   :  { %2722 = vst [vmem:[#allocation27_spill] sm:$0xff] %v2046_v62  ;;  %v976_v1 = vmax.f32 %v968_v50, %v973_v56  ;;  %v2048_v2 = vpop.f32.mrf.mxu0  ;;  %v2050_v3 = vpop.f32.mrf.mxu1  ;;  %v945_v19 = vsel %vm729_vm1, %v2044_v59, -inf  ;;  %vm606_vm7 = vcmp.eq.s32.totalorder %v536_v47, %v2055_v4  ;;  %v977_v47 = vsel %vm729_vm1, %v2046_v62, -inf }
  0xd7   :  { %2723 = vst [vmem:[#allocation28_spill] sm:$0xff] %v2048_v2  ;;  %v883_v10 = vsel %vm729_vm1, %v2048_v2, -inf  ;;  %v915_v15 = vsel %vm729_vm1, %v2050_v3, -inf }
  0xd8   :  { %v984_v16 = vmax.f32 %v976_v1, %v883_v10  ;;  %v731_v1 = vsel %vm729_vm1, %v666_v22, 0.0  ;;  %v668_v10 = vsel %vm604_vm5, %v1933_v63, 0.0  ;;  %v538_v22 = vadd.s32 56, %v2037_v46 }
  0xd9   :  { %v735_v27 = vsel %vm729_vm1, %v668_v10, 0.0 }
  0xda   :  { %v894_v18 = vmax.f32 %v915_v15, %v984_v16  ;;  %v537_v15 = vadd.s32 48, %v2037_v46  ;;  %vm608_vm9 = vcmp.eq.s32.totalorder %v538_v22, %v2055_v4 }
  0xdc   :  { %v902_v28 = vmax.f32 %v894_v18, %v945_v19  ;;  %v733_v18 = vsel %vm729_vm1, %v667_v45, 0.0  ;;  %vm607_vm8 = vcmp.eq.s32.totalorder %v537_v15, %v2055_v4  ;;  %v670_v45 = vsel %vm606_vm7, %v1965_v23, 0.0 }
  0xdd   :  { %v2074_v36 = vpop.f32.mrf.mxu2  ;;  %v2076_v43 = vpop.f32.mrf.mxu3 }
  0xde   :  { %2724 = vst [vmem:[#allocation29_spill] sm:$0xff] %v2076_v43  ;;  %v910_v50 = vmax.f32 %v902_v28, %v975_v31  ;;  %v2081_v53 = vpop.f32.mrf.mxu0  ;;  %v2083_v56 = vpop.f32.mrf.mxu1  ;;  %v732_v28 = vadd.f32 %v731_v1, %v730_v17  ;;  %v539_v1 = vadd.s32 64, %v2037_v46 }
  0xdf   :  { %2725 = vst [vmem:[#allocation30_spill] sm:$0xff] %v2081_v53  ;;  %v885_v5 = vsel %vm729_vm1, %v2081_v53, -inf  ;;  %v917_v19 = vsel %vm729_vm1, %v2083_v56, -inf }
  0xe0   :  { %v918_v16 = vmax.f32 %v910_v50, %v885_v5  ;;  %v947_v50 = vsel %vm729_vm1, %v2074_v36, -inf  ;;  %v734_v5 = vadd.f32 %v733_v18, %v732_v28  ;;  %vm609_vm10 = vcmp.eq.s32.totalorder %v539_v1, %v2055_v4 }
  0xe1   :  { %v673_v11 = vsel %vm609_vm10, %v2013_v13, 0.0  ;;  %v545_v13 = vadd.s32 112, %v2037_v46 }
  0xe2   :  { %v926_v31 = vmax.f32 %v918_v16, %v917_v19  ;;  %v736_v10 = vadd.f32 %v735_v27, %v734_v5  ;;  %v737_v19 = vsel %vm729_vm1, %v669_v25, 0.0  ;;  %v739_v27 = vsel %vm729_vm1, %v670_v45, 0.0 }
  0xe3   :  { %vm615_vm2 = vcmp.eq.s32.totalorder %v545_v13, %v2055_v4  ;;  %v546_v13 = vadd.s32 120, %v2037_v46 }
  0xe4   :  { %v934_v44 = vmax.f32 %v926_v31, %v947_v50  ;;  %v671_v31 = vsel %vm607_vm8, %v1981_v37, 0.0  ;;  %v540_v50 = vadd.s32 72, %v2037_v46  ;;  %v738_v5 = vadd.f32 %v737_v19, %v736_v10 }
  0xe5   :  { %v2106_v17 = vpop.f32.mrf.mxu2  ;;  %v2108_v16 = vpop.f32.mrf.mxu3  ;;  %v741_v22 = vsel %vm729_vm1, %v671_v31, 0.0  ;;  %v979_v19 = vsel %vm729_vm1, %v2076_v43, -inf  ;;  %vm616_vm4 = vcmp.eq.s32.totalorder %v546_v13, %v2055_v4 }
  0xe6   :  { %2726 = vst [vmem:[#allocation31_spill] sm:$0xff] %v2108_v16  ;;  %v940_v18 = vmax.f32 %v977_v47, %v934_v44  ;;  %v2112_v28 = vpop.f32.mrf.mxu0  ;;  %v2114_v15 = vpop.f32.mrf.mxu1  ;;  %v672_v44 = vsel %vm608_vm9, %v1997_v57, 0.0  ;;  %v541_v47 = vadd.s32 80, %v2037_v46  ;;  %v740_v55 = vadd.f32 %v739_v27, %v738_v5 }
  0xe7   :  { %2727 = vst [vmem:[#allocation32_spill] sm:$0xff] %v2112_v28  ;;  %v887_v62 = vsel %vm729_vm1, %v2112_v28, -inf  ;;  %v919_v7 = vsel %vm729_vm1, %v2114_v15, -inf  ;;  %vm610_vm11 = vcmp.eq.s32.totalorder %v540_v50, %v2055_v4  ;;  %v949_v23 = vsel %vm729_vm1, %v2106_v17, -inf }
  0xe8   :  { %v948_v25 = vmax.f32 %v940_v18, %v887_v62  ;;  %v542_v62 = vadd.s32 88, %v2037_v46  ;;  %v742_v10 = vadd.f32 %v741_v22, %v740_v55  ;;  %v743_v1 = vsel %vm729_vm1, %v672_v44, 0.0 }
  0xe9   :  { %v674_v31 = vsel %vm610_vm11, %v2029_v29, 0.0  ;;  %vm611_vm12 = vcmp.eq.s32.totalorder %v541_v47, %v2055_v4  ;;  %v543_v50 = vadd.s32 96, %v2037_v46  ;;  %v544_v22 = vadd.s32 104, %v2037_v46 }
  0xea   :  { %v956_v37 = vmax.f32 %v948_v25, %v919_v7  ;;  %v744_v5 = vadd.f32 %v743_v1, %v742_v10  ;;  %vm612_vm13 = vcmp.eq.s32.totalorder %v542_v62, %v2055_v4  ;;  %v747_v47 = vsel %vm729_vm1, %v674_v31, 0.0 }
  0xeb   :  { %v675_v29 = vsel %vm611_vm12, %v2048_v2, 0.0  ;;  %vm613_vm14 = vcmp.eq.s32.totalorder %v543_v50, %v2055_v4  ;;  %v676_v10 = vsel %vm612_vm13, %v2081_v53, 0.0  ;;  %vm614_vm15 = vcmp.eq.s32.totalorder %v544_v22, %v2055_v4 }
  0xec   :  { %v964_v45 = vmax.f32 %v956_v37, %v949_v23  ;;  %v745_v37 = vsel %vm729_vm1, %v673_v11, 0.0  ;;  %v549_v57 = vadd.s32 144, %v2037_v46 }
  0xed   :  { %v2135_v18 = vpop.f32.mrf.mxu2  ;;  %v2137_v7 = vpop.f32.mrf.mxu3 }
  0xee   :  { %v970_v27 = vmax.f32 %v979_v19, %v964_v45  ;;  %v2142_v25 = vpop.f32.mrf.mxu0  ;;  %v2144_v23 = vpop.f32.mrf.mxu1  ;;  %v746_v19 = vadd.f32 %v745_v37, %v744_v5  ;;  %v951_v62 = vsel %vm729_vm1, %v2135_v18, -inf  ;;  %v981_v37 = vsel %vm729_vm1, %v2108_v16, -inf }
  0xef   :  { %2728 = vst [vmem:[#allocation33_spill] sm:$0xff] %v2142_v25  ;;  %v889_v55 = vsel %vm729_vm1, %v2142_v25, -inf  ;;  %v921_v45 = vsel %vm729_vm1, %v2144_v23, -inf  ;;  %vm619_vm6 = vcmp.eq.s32.totalorder %v549_v57, %v2055_v4 }
  0xf0   :  { %v978_v44 = vmax.f32 %v970_v27, %v889_v55  ;;  %v748_v1 = vadd.f32 %v747_v47, %v746_v19  ;;  %v749_v27 = vsel %vm729_vm1, %v675_v29, 0.0  ;;  %v677_v55 = vsel %vm613_vm14, %v2112_v28, 0.0 }
  0xf1   :  { %v678_v28 = vsel %vm614_vm15, %v2142_v25, 0.0  ;;  %v683_v57 = vsel %vm619_vm6, %v1919_v52, 0.0 }
  0xf2   :  { %v986_v11 = vmax.f32 %v978_v44, %v921_v45  ;;  %v547_v44 = vadd.s32 128, %v2037_v46  ;;  %v751_v45 = vsel %vm729_vm1, %v676_v10, 0.0 }
  0xf4   :  { %v991_v31 = vmax.f32 %v951_v62, %v986_v11  ;;  %v1734_v11 = vmov -inf   ;;  %v750_v62 = vadd.f32 %v749_v27, %v748_v1  ;;  %v548_v1 = vadd.s32 136, %v2037_v46 }
  0xf5   :  { %v2165_v50 = vpop.f32.mrf.mxu2  ;;  %v2167_v5 = vpop.f32.mrf.mxu3  ;;  %21 = vst.msk [vmem:[#allocation2] sm:$0x1] %vm20_vm0, %v1734_v11  ;;  %v755_v27 = vsel %vm729_vm1, %v678_v28, 0.0  ;;  %vm617_vm3 = vcmp.eq.s32.totalorder %v547_v44, %v2055_v4  ;;  %v983_v28 = vsel %vm729_vm1, %v2137_v7, -inf }
  0xf6   :  { %v942_v47 = vmax.f32 %v981_v37, %v991_v31  ;;  %v2171_v19 = vpop.f32.mrf.mxu0  ;;  %v2174_v29 = vpop.f32.mrf.mxu1  ;;  %v753_v31 = vsel %vm729_vm1, %v677_v55, 0.0  ;;  %v752_v2 = vadd.f32 %v751_v45, %v750_v62  ;;  %v953_v25 = vsel %vm729_vm1, %v2165_v50, -inf }
  0xf7   :  { %v891_v53 = vsel %vm729_vm1, %v2171_v19, -inf  ;;  %v923_v10 = vsel %vm729_vm1, %v2174_v29, -inf  ;;  %v679_v16 = vsel %vm615_vm2, %v2171_v19, 0.0  ;;  %v550_v45 = vadd.s32 152, %v2037_v46 }
  0xf8   :  { %v950_v37 = vmax.f32 %v942_v47, %v891_v53  ;;  %v754_v11 = vadd.f32 %v753_v31, %v752_v2  ;;  %v757_v53 = vsel %vm729_vm1, %v679_v16, 0.0  ;;  %vm618_vm5 = vcmp.eq.s32.totalorder %v548_v1, %v2055_v4 }
  0xf9   :  { %v681_v16 = vsel %vm617_vm3, %v1893_v35, 0.0  ;;  %vm620_vm7 = vcmp.eq.s32.totalorder %v550_v45, %v2055_v4 }
  0xfa   :  { %v958_v22 = vmax.f32 %v950_v37, %v923_v10  ;;  %v756_v47 = vadd.f32 %v755_v27, %v754_v11 }
  0xfc   :  { %v966_v55 = vmax.f32 %v958_v22, %v953_v25  ;;  %v758_v25 = vadd.f32 %v757_v53, %v756_v47  ;;  %v551_v22 = vadd.s32 160, %v2037_v46  ;;  %v761_v53 = vsel %vm729_vm1, %v681_v16, 0.0 }
  0xfd   :  { %v2198_v62 = vpop.f32.mrf.mxu2  ;;  %v2200_v10 = vpop.f32.mrf.mxu3  ;;  %v552_v47 = vadd.s32 168, %v2037_v46  ;;  %v684_v16 = vsel %vm620_vm7, %v1935_v0, 0.0 }
  0xfe   :  { %2729 = vst [vmem:[#allocation34_spill] sm:$0xff] %v2198_v62  ;;  %v972_v2 = vmax.f32 %v983_v28, %v966_v55  ;;  %v2203_v31 = vpop.f32.mrf.mxu0  ;;  %v2205_v37 = vpop.f32.mrf.mxu1  ;;  %v682_v55 = vsel %vm618_vm5, %v1905_v42, 0.0  ;;  %vm621_vm8 = vcmp.eq.s32.totalorder %v551_v22, %v2055_v4  ;;  %v554_v22 = vadd.s32 184, %v2037_v46 }
  0xff   :  { %2730 = vst [vmem:[#allocation35_spill] sm:$0xff] %v2203_v31  ;;  %v680_v13 = vsel %vm616_vm4, %v2203_v31, 0.0  ;;  %v893_v27 = vsel %vm729_vm1, %v2203_v31, -inf  ;;  %v925_v44 = vsel %vm729_vm1, %v2205_v37, -inf  ;;  %vm622_vm9 = vcmp.eq.s32.totalorder %v552_v47, %v2055_v4 }
 0x100   :  { %v759_v1 = vsel %vm729_vm1, %v680_v13, 0.0  ;;  %v980_v11 = vmax.f32 %v972_v2, %v893_v27  ;;  %v955_v13 = vsel %vm729_vm1, %v2198_v62, -inf  ;;  %v1735_v2 = vmov 0.0  }
 0x101   :  { %v760_v28 = vadd.f32 %v759_v1, %v758_v25  ;;  %22 = vst.msk [vmem:[#allocation3] sm:$0x1] %vm20_vm0, %v1735_v2  ;;  %v763_v27 = vsel %vm729_vm1, %v682_v55, 0.0  ;;  %v553_v25 = vadd.s32 176, %v2037_v46  ;;  %v686_v47 = vsel %vm622_vm9, %v1967_v24, 0.0 }
 0x102   :  { %v988_v35 = vmax.f32 %v980_v11, %v925_v44  ;;  %23 = vst.msk [vmem:[#allocation4] sm:$0x1] %vm20_vm0, %v1735_v2  ;;  %v555_v2 = vadd.s32 192, %v2037_v46  ;;  %vm624_vm11 = vcmp.eq.s32.totalorder %v554_v22, %v2055_v4 }
 0x103   :  { %v762_v31 = vadd.f32 %v761_v53, %v760_v28  ;;  %v985_v28 = vsel %vm729_vm1, %v2167_v5, -inf  ;;  %v765_v53 = vsel %vm729_vm1, %v683_v57, 0.0  ;;  %vm623_vm10 = vcmp.eq.s32.totalorder %v553_v25, %v2055_v4 }
 0x104   :  { %v974_v1 = vmax.f32 %v955_v13, %v988_v35  ;;  %v685_v35 = vsel %vm621_vm8, %v1951_v12, 0.0  ;;  %v687_v25 = vsel %vm623_vm10, %v1983_v40, 0.0  ;;  %vm625_vm12 = vcmp.eq.s32.totalorder %v555_v2, %v2055_v4 }
 0x105   :  { %v764_v11 = vadd.f32 %v763_v27, %v762_v31  ;;  %v2235_v44 = vpop.f32.mrf.mxu2  ;;  %v767_v31 = vsel %vm729_vm1, %v684_v16, 0.0  ;;  %v2246_v0 = vpop.f32.mrf.mxu3  ;;  %v773_v22 = vsel %vm729_vm1, %v687_v25, 0.0  ;;  %v559_v2 = vadd.s32 224, %v2037_v46 }
 0x106   :  { %2731 = vst [vmem:[#allocation36_spill] sm:$0xff] %v2235_v44  ;;  %v982_v55 = vmax.f32 %v974_v1, %v985_v28  ;;  %v957_v45 = vsel %vm729_vm1, %v2235_v44, -inf  ;;  %v987_v1 = vsel %vm729_vm1, %v2200_v10, -inf  ;;  %v556_v28 = vadd.s32 200, %v2037_v46 }
 0x107   :  { %v766_v13 = vadd.f32 %v765_v53, %v764_v11  ;;  %v769_v11 = vsel %vm729_vm1, %v685_v35, 0.0  ;;  %v688_v35 = vsel %vm624_vm11, %v1999_v58, 0.0  ;;  %vm629_vm2 = vcmp.eq.s32.totalorder %v559_v2, %v2055_v4 }
 0x108   :  { %v990_v27 = vmax.f32 %v982_v55, %v957_v45  ;;  %v989_v55 = vsel %vm729_vm1, %v2246_v0, -inf  ;;  %v771_v45 = vsel %vm729_vm1, %v686_v47, 0.0  ;;  %vm626_vm13 = vcmp.eq.s32.totalorder %v556_v28, %v2055_v4 }
 0x109   :  { %v768_v57 = vadd.f32 %v767_v31, %v766_v13  ;;  %v557_v13 = vadd.s32 208, %v2037_v46  ;;  %v775_v47 = vsel %vm729_vm1, %v688_v35, 0.0  ;;  %v560_v28 = vadd.s32 232, %v2037_v46 }
 0x10a   :  { %v992_v16 = vmax.f32 %v987_v1, %v990_v27  ;;  %v558_v27 = vadd.s32 216, %v2037_v46  ;;  %v689_v1 = vsel %vm625_vm12, %v2015_v14, 0.0  ;;  %v563_v2 = vadd.s32 256, %v2037_v46 }
 0x10b   :  { %v770_v53 = vadd.f32 %v769_v11, %v768_v57  ;;  %vm627_vm14 = vcmp.eq.s32.totalorder %v557_v13, %v2055_v4  ;;  %v777_v25 = vsel %vm729_vm1, %v689_v1, 0.0  ;;  %v561_v13 = vadd.s32 240, %v2037_v46 }
 0x10c   :  { %v993_v31 = vmax.f32 %v989_v55, %v992_v16  ;;  %v690_v55 = vsel %vm626_vm13, %v2031_v30, 0.0  ;;  %vm628_vm15 = vcmp.eq.s32.totalorder %v558_v27, %v2055_v4  ;;  %v691_v14 = vsel %vm627_vm14, %v2050_v3, 0.0 }
 0x10d   :  { %v772_v24 = vadd.f32 %v771_v45, %v770_v53  ;;  %v779_v35 = vsel %vm729_vm1, %v690_v55, 0.0  ;;  %v781_v1 = vsel %vm729_vm1, %v691_v14, 0.0  ;;  %vm630_vm3 = vcmp.eq.s32.totalorder %v560_v28, %v2055_v4 }
 0x10e   :  { %v994_v57 = vrot.slane %v993_v31, 4  ;;  %v562_v27 = vadd.s32 248, %v2037_v46  ;;  %vm631_vm4 = vcmp.eq.s32.totalorder %v561_v13, %v2055_v4  ;;  %v564_v28 = vadd.s32 264, %v2037_v46 }
 0x10f   :  { %v774_v11 = vadd.f32 %v773_v22, %v772_v24  ;;  %v692_v22 = vsel %vm628_vm15, %v2083_v56, 0.0  ;;  %vm633_vm6 = vcmp.eq.s32.totalorder %v563_v2, %v2055_v4  ;;  %v565_v13 = vadd.s32 272, %v2037_v46 }
 0x110   :  { %v995_v16 = vmax.f32 %v993_v31, %v994_v57  ;;  %v783_v55 = vsel %vm729_vm1, %v692_v22, 0.0  ;;  %vm632_vm5 = vcmp.eq.s32.totalorder %v562_v27, %v2055_v4  ;;  %vm634_vm7 = vcmp.eq.s32.totalorder %v564_v28, %v2055_v4 }
 0x111   :  { %v776_v53 = vadd.f32 %v775_v47, %v774_v11  ;;  %v693_v47 = vsel %vm629_vm2, %v2114_v15, 0.0  ;;  %v696_v27 = vsel %vm632_vm5, %v2205_v37, 0.0  ;;  %v697_v2 = vsel %vm633_vm6, %v1899_v38, 0.0 }
 0x112   :  { %v996_v45 = vrot.slane %v995_v16, 2  ;;  %vm635_vm8 = vcmp.eq.s32.totalorder %v565_v13, %v2055_v4  ;;  %v568_v28 = vadd.s32 296, %v2037_v46 }
 0x113   :  { %v778_v24 = vadd.f32 %v777_v25, %v776_v53  ;;  %v2281_v25 = vld [vmem:[#allocation2] sm:$0x1] }
 0x114   :  { %v997_v31 = vmax.f32 %v995_v16, %v996_v45  ;;  %2732 = vst [vmem:[#allocation37_spill] sm:$0xff] %v2281_v25  ;;  %v694_v45 = vsel %vm630_vm3, %v2144_v23, 0.0  ;;  %vm638_vm11 = vcmp.eq.s32.totalorder %v568_v28, %v2055_v4 }
 0x115   :  { %v780_v57 = vadd.f32 %v779_v35, %v778_v24  ;;  %v785_v24 = vsel %vm729_vm1, %v693_v47, 0.0  ;;  %v566_v47 = vadd.s32 280, %v2037_v46 }
 0x116   :  { %v998_v11 = vrot.slane %v997_v31, 1 }
 0x117   :  { %v782_v53 = vadd.f32 %v781_v1, %v780_v57  ;;  %v695_v57 = vsel %vm631_vm4, %v2174_v29, 0.0  ;;  %vm636_vm9 = vcmp.eq.s32.totalorder %v566_v47, %v2055_v4  ;;  %v571_v47 = vadd.s32 320, %v2037_v46 }
 0x118   :  { %v999_v16 = vmax.f32 %v997_v31, %v998_v11  ;;  %v787_v31 = vsel %vm729_vm1, %v694_v45, 0.0  ;;  %v791_v45 = vsel %vm729_vm1, %v696_v27, 0.0  ;;  %v700_v27 = vsel %vm636_vm9, %v1945_v8, 0.0 }
 0x119   :  { %v784_v14 = vadd.f32 %v783_v55, %v782_v53  ;;  %v789_v53 = vsel %vm729_vm1, %v695_v57, 0.0  ;;  %v699_v57 = vsel %vm635_vm8, %v1929_v60, 0.0  ;;  %vm641_vm14 = vcmp.eq.s32.totalorder %v571_v47, %v2055_v4 }
 0x11a   :  { %v2291_v35 = vmax.f32 %v2281_v25, %v999_v16  ;;  %v567_v16 = vadd.s32 288, %v2037_v46  ;;  %v580_v47 = vadd.s32 392, %v2037_v46 }
 0x11b   :  { %v786_v1 = vadd.f32 %v785_v24, %v784_v14  ;;  %v698_v14 = vsel %vm634_vm7, %v1913_v48, 0.0 }
 0x11c   :  { %2733 = vst [vmem:[#allocation38_spill] sm:$0xff] %v2291_v35  ;;  %v795_v13 = vsel %vm729_vm1, %v698_v14, 0.0  ;;  %vm637_vm10 = vcmp.eq.s32.totalorder %v567_v16, %v2055_v4  ;;  %v2325_v14 = vperm.slane %v2291_v35, 0  ;;  %v799_v16 = vsel %vm729_vm1, %v700_v27, 0.0 }
 0x11d   :  { %1336 = vst.msk [vmem:[#allocation2] sm:$0x1] %vm20_vm0, %v2291_v35  ;;  %v788_v11 = vadd.f32 %v787_v31, %v786_v1  ;;  %v793_v1 = vsel %vm729_vm1, %v697_v2, 0.0  ;;  %v569_v31 = vadd.s32 304, %v2037_v46  ;;  %v797_v2 = vsel %vm729_vm1, %v699_v57, 0.0 }
 0x11e   :  { %v705_v27 = vsel %vm641_vm14, %v2025_v26, 0.0  ;;  %vm650_vm8 = vcmp.eq.s32.totalorder %v580_v47, %v2055_v4 }
 0x11f   :  { %v790_v55 = vadd.f32 %v789_v53, %v788_v11  ;;  %v570_v53 = vadd.s32 312, %v2037_v46  ;;  %vm639_vm12 = vcmp.eq.s32.totalorder %v569_v31, %v2055_v4  ;;  %v573_v31 = vadd.s32 336, %v2037_v46 }
 0x120   :  { %v703_v28 = vsel %vm639_vm12, %v1993_v54, 0.0 }
 0x121   :  { %v792_v24 = vadd.f32 %v791_v45, %v790_v55  ;;  %v701_v45 = vsel %vm637_vm10, %v1961_v20, 0.0  ;;  %vm640_vm13 = vcmp.eq.s32.totalorder %v570_v53, %v2055_v4  ;;  %v805_v22 = vsel %vm729_vm1, %v703_v28, 0.0 }
 0x122   :  { %v801_v57 = vsel %vm729_vm1, %v701_v45, 0.0  ;;  %vm643_vm2 = vcmp.eq.s32.totalorder %v573_v31, %v2055_v4  ;;  %v579_v28 = vadd.s32 384, %v2037_v46 }
 0x123   :  { %v794_v11 = vadd.f32 %v793_v1, %v792_v24  ;;  %v702_v1 = vsel %vm638_vm11, %v1977_v32, 0.0  ;;  %v707_v31 = vsel %vm643_vm2, %v2074_v36, 0.0 }
 0x124   :  { %v803_v53 = vsel %vm729_vm1, %v702_v1, 0.0  ;;  %vm649_vm7 = vcmp.eq.s32.totalorder %v579_v28, %v2055_v4  ;;  %v583_v28 = vadd.s32 416, %v2037_v46 }
 0x125   :  { %v796_v55 = vadd.f32 %v795_v13, %v794_v11  ;;  %v572_v13 = vadd.s32 328, %v2037_v46 }
 0x126   :  { %vm653_vm12 = vcmp.eq.s32.totalorder %v583_v28, %v2055_v4  ;;  %v587_v28 = vadd.s32 448, %v2037_v46 }
 0x127   :  { %v798_v24 = vadd.f32 %v797_v2, %v796_v55  ;;  %vm642_vm15 = vcmp.eq.s32.totalorder %v572_v13, %v2055_v4  ;;  %v575_v2 = vadd.s32 352, %v2037_v46 }
 0x128   :  { %v706_v13 = vsel %vm642_vm15, %v2044_v59, 0.0  ;;  %vm657_vm2 = vcmp.eq.s32.totalorder %v587_v28, %v2055_v4 }
 0x129   :  { %v800_v11 = vadd.f32 %v799_v16, %v798_v24  ;;  %v704_v24 = vsel %vm640_vm13, %v2009_v6, 0.0  ;;  %v811_v45 = vsel %vm729_vm1, %v706_v13, 0.0  ;;  %vm645_vm4 = vcmp.eq.s32.totalorder %v575_v2, %v2055_v4 }
 0x12b   :  { %v802_v55 = vadd.f32 %v801_v57, %v800_v11  ;;  %v574_v11 = vadd.s32 344, %v2037_v46  ;;  %v807_v57 = vsel %vm729_vm1, %v704_v24, 0.0  ;;  %v809_v24 = vsel %vm729_vm1, %v705_v27, 0.0 }
 0x12d   :  { %v804_v16 = vadd.f32 %v803_v53, %v802_v55  ;;  %vm644_vm3 = vcmp.eq.s32.totalorder %v574_v11, %v2055_v4  ;;  %v577_v55 = vadd.s32 368, %v2037_v46  ;;  %v813_v11 = vsel %vm729_vm1, %v707_v31, 0.0 }
 0x12e   :  { %v581_v31 = vadd.s32 400, %v2037_v46 }
 0x12f   :  { %v806_v1 = vadd.f32 %v805_v22, %v804_v16  ;;  %v576_v22 = vadd.s32 360, %v2037_v46  ;;  %vm647_vm6 = vcmp.eq.s32.totalorder %v577_v55, %v2055_v4  ;;  %v713_v55 = vsel %vm649_vm7, %v1901_v39, 0.0 }
 0x130   :  { %vm651_vm10 = vcmp.eq.s32.totalorder %v581_v31, %v2055_v4 }
 0x131   :  { %v808_v53 = vadd.f32 %v807_v57, %v806_v1  ;;  %v708_v57 = vsel %vm644_vm3, %v2106_v17, 0.0  ;;  %vm646_vm5 = vcmp.eq.s32.totalorder %v576_v22, %v2055_v4  ;;  %v578_v1 = vadd.s32 376, %v2037_v46 }
 0x132   :  { %v815_v2 = vsel %vm729_vm1, %v708_v57, 0.0  ;;  %v582_v22 = vadd.s32 408, %v2037_v46  ;;  %v715_v31 = vsel %vm651_vm10, %v1931_v61, 0.0  ;;  %v1012_v61 = vsub.f32 %v1933_v63, %v2325_v14 }
 0x133   :  { %v810_v16 = vadd.f32 %v809_v24, %v808_v53  ;;  %v709_v53 = vsel %vm645_vm4, %v2135_v18, 0.0  ;;  %v710_v24 = vsel %vm646_vm5, %v2165_v50, 0.0  ;;  %vm648_vm9 = vcmp.eq.s32.totalorder %v578_v1, %v2055_v4 }
 0x134   :  { %v819_v47 = vsel %vm729_vm1, %v710_v24, 0.0  ;;  %vm652_vm11 = vcmp.eq.s32.totalorder %v582_v22, %v2055_v4  ;;  %v584_v1 = vadd.s32 424, %v2037_v46  ;;  %v590_v63 = vadd.s32 472, %v2037_v46 }
 0x135   :  { %v812_v27 = vadd.f32 %v811_v45, %v810_v16  ;;  %v817_v16 = vsel %vm729_vm1, %v709_v53, 0.0  ;;  %v716_v22 = vsel %vm652_vm11, %v1947_v9, 0.0 }
 0x136   :  { %vm654_vm13 = vcmp.eq.s32.totalorder %v584_v1, %v2055_v4  ;;  %v589_v1 = vadd.s32 464, %v2037_v46  ;;  %vm660_vm5 = vcmp.eq.s32.totalorder %v590_v63, %v2055_v4 }
 0x137   :  { %v814_v13 = vadd.f32 %v813_v11, %v812_v27  ;;  %v711_v27 = vsel %vm647_vm6, %v2198_v62, 0.0  ;;  %v714_v11 = vsel %vm650_vm8, %v1915_v49, 0.0  ;;  %v718_v25 = vsel %vm654_vm13, %v1979_v33, 0.0 }
 0x138   :  { %v821_v53 = vsel %vm729_vm1, %v711_v27, 0.0  ;;  %v827_v35 = vsel %vm729_vm1, %v714_v11, 0.0  ;;  %v1010_v27 = vsub.f32 %v1903_v41, %v2325_v14  ;;  %v586_v11 = vadd.s32 440, %v2037_v46 }
 0x139   :  { %v816_v45 = vadd.f32 %v815_v2, %v814_v13  ;;  %v712_v2 = vsel %vm648_vm9, %v2235_v44, 0.0  ;;  %v831_v41 = vsel %vm729_vm1, %v716_v22, 0.0  ;;  %vm659_vm4 = vcmp.eq.s32.totalorder %v589_v1, %v2055_v4  ;;  %v2740_v1 = vld [vmem:[#allocation19_spill] sm:$0xff] }
 0x13a   :  { %v823_v24 = vsel %vm729_vm1, %v712_v2, 0.0  ;;  %vm656_vm15 = vcmp.eq.s32.totalorder %v586_v11, %v2055_v4  ;;  %v2736_v11 = vld [vmem:[#allocation20_spill] sm:$0xff] }
 0x13b   :  { %v818_v57 = vadd.f32 %v817_v16, %v816_v45  ;;  %v825_v45 = vsel %vm729_vm1, %v713_v55, 0.0  ;;  %v585_v55 = vadd.s32 432, %v2037_v46 }
 0x13d   :  { %v820_v13 = vadd.f32 %v819_v47, %v818_v57  ;;  %v1009_v57 = vsub.f32 %v1891_v34, %v2325_v14  ;;  %v588_v34 = vadd.s32 456, %v2037_v46  ;;  %vm655_vm14 = vcmp.eq.s32.totalorder %v585_v55, %v2055_v4 }
 0x13e   :  { %v1079_v55 = vmul.f32 1.442695, %v1012_v61  ;;  %v719_v28 = vsel %vm655_vm14, %v2736_v11, 0.0  ;;  %v591_v61 = vadd.s32 480, %v2037_v46  ;;  %v2742_v11 = vld [vmem:[#allocation23_spill] sm:$0xff] }
 0x13f   :  { %v822_v16 = vadd.f32 %v821_v53, %v820_v13  ;;  %v717_v13 = vsel %vm653_vm12, %v1963_v21, 0.0  ;;  %v1011_v53 = vsub.f32 %v1917_v51, %v2325_v14  ;;  %v1075_v21 = vmul.f32 1.442695, %v1010_v27 }
 0x140   :  { %v833_v44 = vsel %vm729_vm1, %v717_v13, 0.0  ;;  %vm658_vm3 = vcmp.eq.s32.totalorder %v588_v34, %v2055_v4  ;;  %v2738_v34 = vld [vmem:[#allocation25_spill] sm:$0xff]  ;;  %v1017_v33 = vsub.f32 %v2742_v11, %v2325_v14  ;;  %vm661_vm6 = vcmp.eq.s32.totalorder %v591_v61, %v2055_v4 }
 0x141   :  { %v824_v47 = vadd.f32 %v823_v24, %v822_v16  ;;  %v829_v16 = vsel %vm729_vm1, %v715_v31, 0.0  ;;  %v1073_v24 = vmul.f32 1.442695, %v1009_v57  ;;  %v1077_v31 = vmul.f32 1.442695, %v1011_v53  ;;  %v2739_v53 = vld [vmem:[#allocation27_spill] sm:$0xff] }
 0x142   :  { %v593_v11 = vadd.s32 496, %v2037_v46  ;;  %v2748_v61 = vld [vmem:[#allocation33_spill] sm:$0xff] }
 0x143   :  { %v826_v2 = vadd.f32 %v825_v45, %v824_v47  ;;  %v2734_v45 = vld [vmem:[#allocation14_spill] sm:$0xff]  ;;  %1576 = vpow2.f32 %v1073_v24  ;;  %v2735_v47 = vld [vmem:[#allocation16_spill] sm:$0xff] }
 0x144   :  { %v1013_v57 = vsub.f32 %v2734_v45, %v2325_v14  ;;  %v1014_v27 = vsub.f32 %v2735_v47, %v2325_v14  ;;  %1578 = vpow2.f32 %v1075_v21  ;;  %v1015_v45 = vsub.f32 %v2740_v1, %v2325_v14  ;;  %v2741_v47 = vld [vmem:[#allocation21_spill] sm:$0xff] }
 0x145   :  { %v828_v9 = vadd.f32 %v827_v35, %v826_v2  ;;  %v835_v35 = vsel %vm729_vm1, %v718_v25, 0.0  ;;  %v721_v2 = vsel %vm657_vm2, %v2738_v34, 0.0  ;;  %1580 = vpow2.f32 %v1077_v31 }
 0x146   :  { %v1081_v24 = vmul.f32 1.442695, %v1013_v57  ;;  %v592_v21 = vadd.s32 488, %v2037_v46  ;;  %v1016_v34 = vsub.f32 %v2741_v47, %v2325_v14  ;;  %1582 = vpow2.f32 %v1079_v55  ;;  %v2743_v55 = vld [vmem:[#allocation31_spill] sm:$0xff] }
 0x147   :  { %v830_v51 = vadd.f32 %v829_v16, %v828_v9  ;;  %v2737_v9 = vld [vmem:[#allocation22_spill] sm:$0xff]  ;;  %v722_v16 = vsel %vm658_vm3, %v2739_v53, 0.0  ;;  %v1083_v53 = vmul.f32 1.442695, %v1014_v27  ;;  %v841_v57 = vsel %vm729_vm1, %v721_v2, 0.0 }
 0x148   :  { %v720_v13 = vsel %vm656_vm15, %v2737_v9, 0.0  ;;  %v843_v1 = vsel %vm729_vm1, %v722_v16, 0.0  ;;  %1584 = vpow2.f32 %v1081_v24  ;;  %v724_v27 = vsel %vm660_vm5, %v2743_v55, 0.0  ;;  %v2744_v2 = vld [vmem:[#allocation26_spill] sm:$0xff] }
 0x149   :  { %v832_v22 = vadd.f32 %v831_v41, %v830_v51  ;;  %v723_v41 = vsel %vm659_vm4, %v2076_v43, 0.0  ;;  %v839_v31 = vsel %vm729_vm1, %v720_v13, 0.0  ;;  %vm662_vm7 = vcmp.eq.s32.totalorder %v592_v21, %v2055_v4 }
 0x14a   :  { %v1018_v16 = vsub.f32 %v2744_v2, %v2325_v14  ;;  %1586 = vpow2.f32 %v1083_v53  ;;  %v1089_v55 = vmul.f32 1.442695, %v1017_v33  ;;  %vm663_vm8 = vcmp.eq.s32.totalorder %v593_v11, %v2055_v4  ;;  %v2747_v33 = vld [vmem:[#allocation32_spill] sm:$0xff] }
 0x14b   :  { %v834_v25 = vadd.f32 %v833_v44, %v832_v22  ;;  %v1577_v44 = vpop.eup %1576  ;;  %v837_v22 = vsel %vm729_vm1, %v719_v28, 0.0  ;;  %v1023_v21 = vsub.f32 %v2171_v19, %v2325_v14 }
 0x14c   :  { %v1579_v43 = vpop.eup %1578 }
 0x14d   :  { %v836_v51 = vadd.f32 %v835_v35, %v834_v25  ;;  %v1085_v35 = vmul.f32 1.442695, %v1015_v45  ;;  %v845_v25 = vsel %vm729_vm1, %v723_v41, 0.0  ;;  %v1581_v28 = vpop.eup %1580  ;;  %v2745_v45 = vld [vmem:[#allocation28_spill] sm:$0xff]  ;;  %v1201_v41 = vsel %vm729_vm1, %v1577_v44, 0.0 }
 0x14e   :  { %v1019_v24 = vsub.f32 %v2745_v45, %v2325_v14  ;;  %v1202_v63 = vsel %vm729_vm1, %v1579_v43, 0.0  ;;  %v1583_v47 = vpop.eup %1582  ;;  %v1204_v2 = vsel %vm729_vm1, %v1581_v28, 0.0  ;;  %v1091_v44 = vmul.f32 1.442695, %v1018_v16 }
 0x14f   :  { %v838_v9 = vadd.f32 %v837_v22, %v836_v51  ;;  %v1087_v51 = vmul.f32 1.442695, %v1016_v34  ;;  %1588 = vpow2.f32 %v1085_v35  ;;  %v1203_v49 = vadd.f32 %v1202_v63, %v1201_v41  ;;  %v2746_v34 = vld [vmem:[#allocation30_spill] sm:$0xff]  ;;  %v1585_v62 = vpop.eup %1584 }
 0x150   :  { %v1020_v53 = vsub.f32 %v2746_v34, %v2325_v14  ;;  %v725_v43 = vsel %vm661_vm6, %v2137_v7, 0.0  ;;  %v1587_v35 = vpop.eup %1586  ;;  %v1093_v28 = vmul.f32 1.442695, %v1019_v24  ;;  %v1208_v16 = vsel %vm729_vm1, %v1585_v62, 0.0 }
 0x151   :  { %v840_v13 = vadd.f32 %v839_v31, %v838_v9  ;;  %v847_v9 = vsel %vm729_vm1, %v724_v27, 0.0  ;;  %v594_v31 = vadd.s32 504, %v2037_v46  ;;  %1590 = vpow2.f32 %v1087_v51 }
 0x152   :  { %v1205_v39 = vadd.f32 %v1204_v2, %v1203_v49  ;;  %v1206_v46 = vsel %vm729_vm1, %v1583_v47, 0.0  ;;  %1592 = vpow2.f32 %v1089_v55  ;;  %v726_v49 = vsel %vm662_vm7, %v2167_v5, 0.0  ;;  %v2749_v2 = vld [vmem:[#allocation35_spill] sm:$0xff] }
 0x153   :  { %v842_v22 = vadd.f32 %v841_v57, %v840_v13  ;;  %v1021_v57 = vsub.f32 %v2747_v33, %v2325_v14  ;;  %vm664_vm9 = vcmp.eq.s32.totalorder %v594_v31, %v2055_v4  ;;  %1594 = vpow2.f32 %v1091_v44 }
 0x154   :  { %v1207_v13 = vadd.f32 %v1206_v46, %v1205_v39  ;;  %v1095_v63 = vmul.f32 1.442695, %v1020_v53  ;;  %v727_v39 = vsel %vm663_vm8, %v2200_v10, 0.0  ;;  %v1210_v55 = vsel %vm729_vm1, %v1587_v35, 0.0 }
 0x155   :  { %v844_v45 = vadd.f32 %v843_v1, %v842_v22  ;;  %v1022_v1 = vsub.f32 %v2748_v61, %v2325_v14  ;;  %v1589_v51 = vpop.eup %1588  ;;  %1596 = vpow2.f32 %v1093_v28  ;;  %v1097_v62 = vmul.f32 1.442695, %v1021_v57  ;;  %v2750_v57 = vld [vmem:[#allocation8_spill] sm:$0xff] }
 0x156   :  { %v1209_v47 = vadd.f32 %v1208_v16, %v1207_v13  ;;  %v728_v53 = vsel %vm664_vm9, %v2246_v0, 0.0  ;;  %v1024_v11 = vsub.f32 %v2749_v2, %v2325_v14  ;;  %1598 = vpow2.f32 %v1095_v63 }
 0x157   :  { %v846_v27 = vadd.f32 %v845_v25, %v844_v45  ;;  %v849_v25 = vsel %vm729_vm1, %v725_v43, 0.0  ;;  %v1591_v24 = vpop.eup %1590  ;;  %v1212_v45 = vsel %vm729_vm1, %v1589_v51, 0.0  ;;  %v1099_v43 = vmul.f32 1.442695, %v1022_v1 }
 0x158   :  { %v1211_v34 = vadd.f32 %v1210_v55, %v1209_v47  ;;  %v1593_v44 = vpop.eup %1592  ;;  %v853_v46 = vsel %vm729_vm1, %v727_v39, 0.0  ;;  %v1025_v35 = vsub.f32 %v2750_v57, %v2325_v14  ;;  %1600 = vpow2.f32 %v1097_v62 }
 0x159   :  { %v848_v41 = vadd.f32 %v847_v9, %v846_v27  ;;  %v851_v9 = vsel %vm729_vm1, %v726_v49, 0.0  ;;  %v1214_v27 = vsel %vm729_vm1, %v1591_v24, 0.0  ;;  %v1595_v28 = vpop.eup %1594  ;;  %v1101_v31 = vmul.f32 1.442695, %v1023_v21 }
 0x15a   :  { %v1213_v33 = vadd.f32 %v1212_v45, %v1211_v34  ;;  %v855_v49 = vsel %vm729_vm1, %v728_v53, 0.0  ;;  %v1026_v61 = vsub.f32 %v1905_v42, %v2325_v14  ;;  %v1216_v1 = vsel %vm729_vm1, %v1593_v44, 0.0 }
 0x15b   :  { %v850_v22 = vadd.f32 %v849_v25, %v848_v41  ;;  %v1597_v16 = vpop.eup %1596  ;;  %1602 = vpow2.f32 %v1099_v43  ;;  %v1103_v41 = vmul.f32 1.442695, %v1024_v11  ;;  %v1027_v47 = vsub.f32 %v1919_v52, %v2325_v14 }
 0x15c   :  { %v1215_v13 = vadd.f32 %v1214_v27, %v1213_v33  ;;  %v1218_v25 = vsel %vm729_vm1, %v1595_v28, 0.0  ;;  %v1599_v39 = vpop.eup %1598  ;;  %1604 = vpow2.f32 %v1101_v31  ;;  %v1105_v55 = vmul.f32 1.442695, %v1025_v35  ;;  %v2752_v33 = vld [vmem:[#allocation17_spill] sm:$0xff] }
 0x15d   :  { %v852_v19 = vadd.f32 %v851_v9, %v850_v22  ;;  %v2751_v22 = vld [vmem:[#allocation12_spill] sm:$0xff]  ;;  %v1220_v62 = vsel %vm729_vm1, %v1597_v16, 0.0  ;;  %1606 = vpow2.f32 %v1103_v41  ;;  %v1107_v53 = vmul.f32 1.442695, %v1026_v61  ;;  %v599_v16 = vld [vmem:[#allocation4] sm:$0x1] }
 0x15e   :  { %v1217_v63 = vadd.f32 %v1216_v1, %v1215_v13  ;;  %v1028_v42 = vsub.f32 %v2751_v22, %v2325_v14  ;;  %v1601_v34 = vpop.eup %1600  ;;  %v1029_v52 = vsub.f32 %v1951_v12, %v2325_v14  ;;  %v1222_v11 = vsel %vm729_vm1, %v1599_v39, 0.0 }
 0x15f   :  { %v854_v4 = vadd.f32 %v853_v46, %v852_v19  ;;  %1608 = vpow2.f32 %v1105_v55  ;;  %v1109_v19 = vmul.f32 1.442695, %v1027_v47  ;;  %v1030_v46 = vsub.f32 %v2752_v33, %v2325_v14 }
 0x160   :  { %v1219_v24 = vadd.f32 %v1218_v25, %v1217_v63  ;;  %v1224_v57 = vsel %vm729_vm1, %v1601_v34, 0.0  ;;  %1610 = vpow2.f32 %v1107_v53  ;;  %v1111_v28 = vmul.f32 1.442695, %v1028_v42 }
 0x161   :  { %v856_v51 = vadd.f32 %v855_v49, %v854_v4  ;;  %v1603_v45 = vpop.eup %1602  ;;  %v1031_v12 = vsub.f32 %v1983_v40, %v2325_v14  ;;  %1612 = vpow2.f32 %v1109_v19  ;;  %v1113_v61 = vmul.f32 1.442695, %v1029_v52  ;;  %v2753_v40 = vld [vmem:[#allocation24_spill] sm:$0xff] }
 0x162   :  { %v1221_v2 = vadd.f32 %v1220_v62, %v1219_v24  ;;  %v1605_v35 = vpop.eup %1604  ;;  %v1226_v31 = vsel %vm729_vm1, %v1603_v45, 0.0  ;;  %1614 = vpow2.f32 %v1111_v28  ;;  %v1115_v25 = vmul.f32 1.442695, %v1030_v46 }
 0x163   :  { %v857_v21 = vrot.slane %v856_v51, 4  ;;  %v1607_v13 = vpop.eup %1606  ;;  %v1228_v41 = vsel %vm729_vm1, %v1605_v35, 0.0  ;;  %1616 = vpow2.f32 %v1113_v61  ;;  %v1117_v42 = vmul.f32 1.442695, %v1031_v12 }
 0x164   :  { %v1223_v43 = vadd.f32 %v1222_v11, %v1221_v2  ;;  %v1230_v55 = vsel %vm729_vm1, %v1607_v13, 0.0  ;;  %1618 = vpow2.f32 %v1115_v25  ;;  %v1035_v45 = vsub.f32 %v2050_v3, %v2325_v14 }
 0x165   :  { %v858_v9 = vadd.f32 %v857_v21, %v856_v51  ;;  %v1032_v51 = vsub.f32 %v1999_v58, %v2325_v14  ;;  %v1609_v63 = vpop.eup %1608  ;;  %v1033_v21 = vsub.f32 %v2753_v40, %v2325_v14  ;;  %1620 = vpow2.f32 %v1117_v42 }
 0x166   :  { %v1225_v4 = vadd.f32 %v1224_v57, %v1223_v43  ;;  %v1611_v24 = vpop.eup %1610  ;;  %v1232_v34 = vsel %vm729_vm1, %v1609_v63, 0.0  ;;  %v1036_v46 = vsub.f32 %v2083_v56, %v2325_v14  ;;  %v1037_v28 = vsub.f32 %v2114_v15, %v2325_v14 }
 0x167   :  { %v859_v44 = vrot.slane %v858_v9, 2  ;;  %v1613_v58 = vpop.eup %1612  ;;  %v1119_v53 = vmul.f32 1.442695, %v1032_v51  ;;  %v1234_v52 = vsel %vm729_vm1, %v1611_v24, 0.0  ;;  %v1125_v3 = vmul.f32 1.442695, %v1035_v45 }
 0x168   :  { %v1227_v1 = vadd.f32 %v1226_v31, %v1225_v4  ;;  %v1615_v11 = vpop.eup %1614  ;;  %v1236_v43 = vsel %vm729_vm1, %v1613_v58, 0.0  ;;  %v1038_v13 = vsub.f32 %v2144_v23, %v2325_v14  ;;  %v1127_v56 = vmul.f32 1.442695, %v1036_v46 }
 0x169   :  { %v860_v27 = vadd.f32 %v859_v44, %v858_v9  ;;  %v1034_v9 = vsub.f32 %v2031_v30, %v2325_v14  ;;  %v1121_v44 = vmul.f32 1.442695, %v1033_v21  ;;  %v1617_v33 = vpop.eup %1616  ;;  %1622 = vpow2.f32 %v1119_v53 }
 0x16a   :  { %v1229_v39 = vadd.f32 %v1228_v41, %v1227_v1  ;;  %v1238_v35 = vsel %vm729_vm1, %v1615_v11, 0.0  ;;  %v1240_v12 = vsel %vm729_vm1, %v1617_v33, 0.0  ;;  %v1129_v15 = vmul.f32 1.442695, %v1037_v28 }
 0x16b   :  { %v861_v49 = vrot.slane %v860_v27, 1  ;;  %v1123_v30 = vmul.f32 1.442695, %v1034_v9  ;;  %1624 = vpow2.f32 %v1121_v44  ;;  %v1131_v23 = vmul.f32 1.442695, %v1038_v13 }
 0x16c   :  { %v1231_v62 = vadd.f32 %v1230_v55, %v1229_v39  ;;  %v1041_v21 = vsub.f32 %v1899_v38, %v2325_v14  ;;  %v1042_v42 = vsub.f32 %v1913_v48, %v2325_v14  ;;  %v1043_v9 = vsub.f32 %v1929_v60, %v2325_v14 }
 0x16d   :  { %v862_v47 = vadd.f32 %v861_v49, %v860_v27  ;;  %v1619_v27 = vpop.eup %1618  ;;  %1626 = vpow2.f32 %v1123_v30  ;;  %v1044_v11 = vsub.f32 %v1945_v8, %v2325_v14  ;;  %v1048_v13 = vsub.f32 %v2009_v6, %v2325_v14 }
 0x16e   :  { %v1233_v2 = vadd.f32 %v1232_v34, %v1231_v62  ;;  %v1621_v31 = vpop.eup %1620  ;;  %v1242_v61 = vsel %vm729_vm1, %v1619_v27, 0.0  ;;  %1628 = vpow2.f32 %v1125_v3  ;;  %v1137_v38 = vmul.f32 1.442695, %v1041_v21 }
 0x16f   :  { %v863_v22 = vadd.f32 %v862_v47, %v599_v16  ;;  %v1623_v1 = vpop.eup %1622  ;;  %v1039_v16 = vsub.f32 %v2174_v29, %v2325_v14  ;;  %v1244_v41 = vsel %vm729_vm1, %v1621_v31, 0.0  ;;  %v1040_v47 = vsub.f32 %v2205_v37, %v2325_v14 }
 0x170   :  { %v1235_v19 = vadd.f32 %v1234_v52, %v1233_v2  ;;  %1630 = vpow2.f32 %v1127_v56  ;;  %v1246_v39 = vsel %vm729_vm1, %v1623_v1, 0.0  ;;  %v1139_v48 = vmul.f32 1.442695, %v1042_v42 }
 0x171   :  { %865 = vst.msk [vmem:[#allocation4] sm:$0x1] %vm20_vm0, %v863_v22  ;;  %v1625_v63 = vpop.eup %1624  ;;  %1632 = vpow2.f32 %v1129_v15  ;;  %v1133_v29 = vmul.f32 1.442695, %v1039_v16  ;;  %v1135_v37 = vmul.f32 1.442695, %v1040_v47  ;;  %v1047_v3 = vsub.f32 %v1993_v54, %v2325_v14 }
 0x172   :  { %v1237_v57 = vadd.f32 %v1236_v43, %v1235_v19  ;;  %v1248_v24 = vsel %vm729_vm1, %v1625_v63, 0.0  ;;  %1634 = vpow2.f32 %v1131_v23  ;;  %v1045_v43 = vsub.f32 %v1961_v20, %v2325_v14 }
 0x173   :  { %v1627_v40 = vpop.eup %1626  ;;  %1636 = vpow2.f32 %v1133_v29  ;;  %v1141_v60 = vmul.f32 1.442695, %v1043_v9  ;;  %v1143_v8 = vmul.f32 1.442695, %v1044_v11  ;;  %v1049_v1 = vsub.f32 %v2025_v26, %v2325_v14 }
 0x174   :  { %v1239_v4 = vadd.f32 %v1238_v35, %v1237_v57  ;;  %v1629_v22 = vpop.eup %1628  ;;  %v1250_v34 = vsel %vm729_vm1, %v1627_v40, 0.0  ;;  %1638 = vpow2.f32 %v1135_v37  ;;  %v1046_v57 = vsub.f32 %v1977_v32, %v2325_v14 }
 0x175   :  { %v1252_v2 = vsel %vm729_vm1, %v1629_v22, 0.0  ;;  %1640 = vpow2.f32 %v1137_v38  ;;  %v1145_v20 = vmul.f32 1.442695, %v1045_v43  ;;  %v1149_v54 = vmul.f32 1.442695, %v1047_v3 }
 0x176   :  { %v1241_v49 = vadd.f32 %v1240_v12, %v1239_v4  ;;  %v1631_v58 = vpop.eup %1630  ;;  %1642 = vpow2.f32 %v1139_v48  ;;  %v1147_v32 = vmul.f32 1.442695, %v1046_v57  ;;  %v1151_v6 = vmul.f32 1.442695, %v1048_v13  ;;  %v2762_v13 = vld [vmem:[#allocation11_spill] sm:$0xff] }
 0x177   :  { %v1633_v52 = vpop.eup %1632  ;;  %v1254_v44 = vsel %vm729_vm1, %v1631_v58, 0.0  ;;  %1644 = vpow2.f32 %v1141_v60  ;;  %v1153_v26 = vmul.f32 1.442695, %v1049_v1  ;;  %v1052_v29 = vsub.f32 %v2106_v17, %v2325_v14  ;;  %v2756_v60 = vld [vmem:[#allocation9_spill] sm:$0xff] }
 0x178   :  { %v1243_v51 = vadd.f32 %v1242_v61, %v1241_v49  ;;  %v1635_v19 = vpop.eup %1634  ;;  %v1256_v46 = vsel %vm729_vm1, %v1633_v52, 0.0  ;;  %1646 = vpow2.f32 %v1143_v8  ;;  %v2754_v17 = vsub.f32 %v2135_v18, %v2325_v14 }
 0x179   :  { %v1637_v30 = vpop.eup %1636  ;;  %v1258_v27 = vsel %vm729_vm1, %v1635_v19, 0.0  ;;  %1648 = vpow2.f32 %v1145_v20  ;;  %v2755_v48 = vsub.f32 %v2165_v50, %v2325_v14 }
 0x17a   :  { %v1245_v25 = vadd.f32 %v1244_v41, %v1243_v51  ;;  %v1639_v28 = vpop.eup %1638  ;;  %v1260_v12 = vsel %vm729_vm1, %v1637_v30, 0.0  ;;  %v1050_v41 = vsub.f32 %v2044_v59, %v2325_v14  ;;  %1650 = vpow2.f32 %v1147_v32 }
 0x17b   :  { %v1641_v31 = vpop.eup %1640  ;;  %v1262_v49 = vsel %vm729_vm1, %v1639_v28, 0.0  ;;  %1652 = vpow2.f32 %v1149_v54  ;;  %v2760_v28 = vld [vmem:[#allocation36_spill] sm:$0xff]  ;;  %v1059_v32 = vsub.f32 %v2762_v13, %v2325_v14  ;;  %v2763_v54 = vld [vmem:[#allocation13_spill] sm:$0xff] }
 0x17c   :  { %v1247_v55 = vadd.f32 %v1246_v39, %v1245_v25  ;;  %v1643_v61 = vpop.eup %1642  ;;  %v1264_v15 = vsel %vm729_vm1, %v1641_v31, 0.0  ;;  %v1051_v25 = vsub.f32 %v2074_v36, %v2325_v14  ;;  %1654 = vpow2.f32 %v1151_v6 }
 0x17d   :  { %v1645_v51 = vpop.eup %1644  ;;  %v1266_v47 = vsel %vm729_vm1, %v1643_v61, 0.0  ;;  %v1155_v59 = vmul.f32 1.442695, %v1050_v41  ;;  %1656 = vpow2.f32 %v1153_v26  ;;  %v2761_v3 = vsub.f32 %v2760_v28, %v2325_v14 }
 0x17e   :  { %v1249_v62 = vadd.f32 %v1248_v24, %v1247_v55  ;;  %v1647_v23 = vpop.eup %1646  ;;  %v1268_v40 = vsel %vm729_vm1, %v1645_v51, 0.0  ;;  %v1157_v42 = vmul.f32 1.442695, %v1051_v25 }
 0x17f   :  { %v1649_v21 = vpop.eup %1648  ;;  %v1270_v24 = vsel %vm729_vm1, %v1647_v23, 0.0  ;;  %1658 = vpow2.f32 %v1155_v59  ;;  %v1167_v20 = vmul.f32 1.442695, %v2761_v3  ;;  %v1173_v23 = vmul.f32 1.442695, %v1059_v32  ;;  %v2771_v3 = vld [vmem:[#allocation31_spill] sm:$0xff] }
 0x180   :  { %v1251_v53 = vadd.f32 %v1250_v34, %v1249_v62  ;;  %v1651_v22 = vpop.eup %1650  ;;  %v1272_v36 = vsel %vm729_vm1, %v1649_v21, 0.0  ;;  %v1159_v34 = vmul.f32 1.442695, %v1052_v29  ;;  %1660 = vpow2.f32 %v1157_v42 }
 0x181   :  { %v1653_v62 = vpop.eup %1652  ;;  %v1274_v9 = vsel %vm729_vm1, %v1651_v22, 0.0  ;;  %v2766_v22 = vld [vmem:[#allocation20_spill] sm:$0xff]  ;;  %v1069_v32 = vsub.f32 %v2137_v7, %v2325_v14  ;;  %v2772_v7 = vsub.f32 %v2167_v5, %v2325_v14 }
 0x182   :  { %v1253_v45 = vadd.f32 %v1252_v2, %v1251_v53  ;;  %v1655_v38 = vpop.eup %1654  ;;  %v1161_v53 = vmul.f32 1.442695, %v2754_v17  ;;  %v1276_v52 = vsel %vm729_vm1, %v1653_v62, 0.0  ;;  %1662 = vpow2.f32 %v1159_v34 }
 0x183   :  { %v1657_v11 = vpop.eup %1656  ;;  %v1278_v19 = vsel %vm729_vm1, %v1655_v38, 0.0  ;;  %v1063_v42 = vsub.f32 %v2766_v22, %v2325_v14 }
 0x184   :  { %v1255_v33 = vadd.f32 %v1254_v44, %v1253_v45  ;;  %v1163_v45 = vmul.f32 1.442695, %v2755_v48  ;;  %1664 = vpow2.f32 %v1161_v53  ;;  %v1280_v8 = vsel %vm729_vm1, %v1657_v11, 0.0 }
 0x185   :  { %v1659_v43 = vpop.eup %1658  ;;  %v1181_v48 = vmul.f32 1.442695, %v1063_v42 }
 0x186   :  { %v1257_v35 = vadd.f32 %v1256_v46, %v1255_v33  ;;  %v1057_v33 = vsub.f32 %v2756_v60, %v2325_v14  ;;  %v2757_v46 = vld [vmem:[#allocation34_spill] sm:$0xff]  ;;  %1666 = vpow2.f32 %v1163_v45 }
 0x187   :  { %v2758_v18 = vsub.f32 %v2757_v46, %v2325_v14 }
 0x188   :  { %v1259_v4 = vadd.f32 %v1258_v27, %v1257_v35  ;;  %v1661_v35 = vpop.eup %1660  ;;  %v2759_v27 = vld [vmem:[#allocation10_spill] sm:$0xff] }
 0x189   :  { %v1165_v30 = vmul.f32 1.442695, %v2758_v18  ;;  %v1058_v50 = vsub.f32 %v2759_v27, %v2325_v14  ;;  %v1663_v31 = vpop.eup %1662  ;;  %v1284_v61 = vsel %vm729_vm1, %v1661_v35, 0.0 }
 0x18a   :  { %v1261_v56 = vadd.f32 %v1260_v12, %v1259_v4  ;;  %v1282_v12 = vsel %vm729_vm1, %v1659_v43, 0.0  ;;  %v1665_v1 = vpop.eup %1664  ;;  %v1286_v41 = vsel %vm729_vm1, %v1663_v31, 0.0  ;;  %v2769_v43 = vld [vmem:[#allocation27_spill] sm:$0xff] }
 0x18b   :  { %1668 = vpow2.f32 %v1165_v30  ;;  %v1288_v26 = vsel %vm729_vm1, %v1665_v1, 0.0  ;;  %v1066_v60 = vsub.f32 %v2769_v43, %v2325_v14 }
 0x18c   :  { %v1263_v16 = vadd.f32 %v1262_v49, %v1261_v56  ;;  %v1169_v56 = vmul.f32 1.442695, %v1057_v33  ;;  %1670 = vpow2.f32 %v1167_v20  ;;  %v1667_v6 = vpop.eup %1666  ;;  %v1068_v20 = vsub.f32 %v2771_v3, %v2325_v14 }
 0x18e   :  { %v1265_v63 = vadd.f32 %v1264_v15, %v1263_v16  ;;  %v1060_v16 = vsub.f32 %v2763_v54, %v2325_v14  ;;  %v1171_v15 = vmul.f32 1.442695, %v1058_v50  ;;  %1672 = vpow2.f32 %v1169_v56 }
 0x18f   :  { %v1191_v54 = vmul.f32 1.442695, %v1068_v20 }
 0x190   :  { %v1267_v39 = vadd.f32 %v1266_v47, %v1265_v63  ;;  %v2764_v63 = vld [vmem:[#allocation15_spill] sm:$0xff]  ;;  %1674 = vpow2.f32 %v1171_v15  ;;  %v1175_v29 = vmul.f32 1.442695, %v1060_v16 }
 0x191   :  { %v1061_v47 = vsub.f32 %v2764_v63, %v2325_v14  ;;  %1676 = vpow2.f32 %v1173_v23  ;;  %v1195_v23 = vmul.f32 1.442695, %v2772_v7 }
 0x192   :  { %v1269_v55 = vadd.f32 %v1268_v40, %v1267_v39  ;;  %v1669_v39 = vpop.eup %1668  ;;  %v2765_v40 = vld [vmem:[#allocation18_spill] sm:$0xff]  ;;  %1678 = vpow2.f32 %v1175_v29 }
 0x193   :  { %v1062_v21 = vsub.f32 %v2765_v40, %v2325_v14  ;;  %v1292_v62 = vsel %vm729_vm1, %v1669_v39, 0.0  ;;  %v2773_v40 = vsub.f32 %v2200_v10, %v2325_v14 }
 0x194   :  { %v1271_v37 = vadd.f32 %v1270_v24, %v1269_v55  ;;  %v1290_v55 = vsel %vm729_vm1, %v1667_v6, 0.0  ;;  %v1671_v24 = vpop.eup %1670 }
 0x195   :  { %v1673_v34 = vpop.eup %1672  ;;  %v1179_v38 = vmul.f32 1.442695, %v1062_v21  ;;  %v1294_v53 = vsel %vm729_vm1, %v1671_v24, 0.0  ;;  %v1197_v21 = vmul.f32 1.442695, %v2773_v40  ;;  %v2774_v24 = vsub.f32 %v2246_v0, %v2325_v14 }
 0x196   :  { %v1273_v58 = vadd.f32 %v1272_v36, %v1271_v37  ;;  %v1177_v37 = vmul.f32 1.442695, %v1061_v47 }
 0x197   :  { %v1199_v22 = vmul.f32 1.442695, %v2774_v24 }
 0x198   :  { %v1275_v2 = vadd.f32 %v1274_v9, %v1273_v58  ;;  %v2767_v58 = vld [vmem:[#allocation22_spill] sm:$0xff]  ;;  %1680 = vpow2.f32 %v1177_v37 }
 0x199   :  { %v1064_v9 = vsub.f32 %v2767_v58, %v2325_v14  ;;  %1682 = vpow2.f32 %v1179_v38 }
 0x19a   :  { %v1277_v44 = vadd.f32 %v1276_v52, %v1275_v2  ;;  %v1675_v2 = vpop.eup %1674  ;;  %v2768_v52 = vld [vmem:[#allocation25_spill] sm:$0xff]  ;;  %1684 = vpow2.f32 %v1181_v48 }
 0x19b   :  { %v1065_v11 = vsub.f32 %v2768_v52, %v2325_v14  ;;  %v1183_v33 = vmul.f32 1.442695, %v1064_v9  ;;  %v1298_v18 = vsel %vm729_vm1, %v1675_v2, 0.0 }
 0x19c   :  { %v1279_v57 = vadd.f32 %v1278_v19, %v1277_v44  ;;  %v1296_v44 = vsel %vm729_vm1, %v1673_v34, 0.0  ;;  %v1677_v19 = vpop.eup %1676 }
 0x19d   :  { %v1679_v30 = vpop.eup %1678  ;;  %v1185_v35 = vmul.f32 1.442695, %v1065_v11  ;;  %v1300_v50 = vsel %vm729_vm1, %v1677_v19, 0.0  ;;  %1686 = vpow2.f32 %v1183_v33 }
 0x19e   :  { %v1281_v4 = vadd.f32 %v1280_v8, %v1279_v57  ;;  %v2770_v57 = vld [vmem:[#allocation29_spill] sm:$0xff]  ;;  %v1681_v28 = vpop.eup %1680  ;;  %v1302_v31 = vsel %vm729_vm1, %v1679_v30, 0.0 }
 0x19f   :  { %v1067_v8 = vsub.f32 %v2770_v57, %v2325_v14  ;;  %v1683_v13 = vpop.eup %1682  ;;  %1688 = vpow2.f32 %v1185_v35  ;;  %v1001_v35 = vld [vmem:[#allocation3] sm:$0x1] }
 0x1a0   :  { %v1283_v49 = vadd.f32 %v1282_v12, %v1281_v4  ;;  %v1187_v4 = vmul.f32 1.442695, %v1066_v60  ;;  %v1685_v1 = vpop.eup %1684  ;;  %v1306_v15 = vsel %vm729_vm1, %v1683_v13, 0.0 }
 0x1a1   :  { %v1189_v56 = vmul.f32 1.442695, %v1067_v8  ;;  %v1308_v63 = vsel %vm729_vm1, %v1685_v1, 0.0 }
 0x1a2   :  { %v1285_v51 = vadd.f32 %v1284_v61, %v1283_v49  ;;  %v1304_v61 = vsel %vm729_vm1, %v1681_v28, 0.0  ;;  %1690 = vpow2.f32 %v1187_v4 }
 0x1a3   :  { %1692 = vpow2.f32 %v1189_v56 }
 0x1a4   :  { %v1287_v25 = vadd.f32 %v1286_v41, %v1285_v51  ;;  %v1687_v51 = vpop.eup %1686  ;;  %v1193_v41 = vmul.f32 1.442695, %v1069_v32  ;;  %1694 = vpow2.f32 %v1191_v54  ;;  %v1340_v32 = vld [vmem:[#allocation4] sm:$0x1] }
 0x1a5   :  { %v1689_v47 = vpop.eup %1688 }
 0x1a6   :  { %v1289_v59 = vadd.f32 %v1288_v26, %v1287_v25  ;;  %v1310_v26 = vsel %vm729_vm1, %v1687_v51, 0.0  ;;  %1696 = vpow2.f32 %v1193_v41 }
 0x1a7   :  { %1698 = vpow2.f32 %v1195_v23 }
 0x1a8   :  { %v1291_v36 = vadd.f32 %v1290_v55, %v1289_v59  ;;  %v1691_v39 = vpop.eup %1690  ;;  %v1312_v59 = vsel %vm729_vm1, %v1689_v47, 0.0  ;;  %1700 = vpow2.f32 %v1197_v21 }
 0x1a9   :  { %v1693_v55 = vpop.eup %1692  ;;  %v1314_v42 = vsel %vm729_vm1, %v1691_v39, 0.0  ;;  %1702 = vpow2.f32 %v1199_v22 }
 0x1aa   :  { %v1293_v17 = vadd.f32 %v1292_v62, %v1291_v36  ;;  %v1695_v37 = vpop.eup %1694  ;;  %v1316_v62 = vsel %vm729_vm1, %v1693_v55, 0.0 }
 0x1ab   :  { %v1318_v58 = vsel %vm729_vm1, %v1695_v37, 0.0 }
 0x1ac   :  { %v1295_v45 = vadd.f32 %v1294_v53, %v1293_v17  ;;  %v1697_v34 = vpop.eup %1696 }
 0x1ad   :  { %v1699_v9 = vpop.eup %1698  ;;  %v1320_v17 = vsel %vm729_vm1, %v1697_v34, 0.0 }
 0x1ae   :  { %v1297_v46 = vadd.f32 %v1296_v44, %v1295_v45  ;;  %v1701_v53 = vpop.eup %1700  ;;  %v1322_v14 = vsel %vm729_vm1, %v1699_v9, 0.0  ;;  %v2775_v45 = vld [vmem:[#allocation37_spill] sm:$0xff]  ;;  %v2776_v44 = vld [vmem:[#allocation38_spill] sm:$0xff] }
 0x1af   :  { %v1703_v2 = vpop.eup %1702  ;;  %v1324_v11 = vsel %vm729_vm1, %v1701_v53, 0.0  ;;  %v2777_v19 = vsub.f32 %v2775_v45, %v2776_v44 }
 0x1b0   :  { %v1299_v27 = vadd.f32 %v1298_v18, %v1297_v46  ;;  %v1326_v60 = vsel %vm729_vm1, %v1703_v2, 0.0 }
 0x1b1   :  { %v1003_v43 = vmul.f32 1.442695, %v2777_v19 }
 0x1b2   :  { %v1301_v12 = vadd.f32 %v1300_v50, %v1299_v27 }
 0x1b3   :  { %1704 = vpow2.f32 %v1003_v43 }
 0x1b4   :  { %v1303_v49 = vadd.f32 %v1302_v31, %v1301_v12  ;;  %v1341_v31 = vld [vmem:[#allocation2] sm:$0x1] }
 0x1b6   :  { %v1305_v16 = vadd.f32 %v1304_v61, %v1303_v49 }
 0x1b8   :  { %v1307_v6 = vadd.f32 %v1306_v15, %v1305_v16 }
 0x1b9   :  { %v1705_v8 = vpop.eup %1704 }
 0x1ba   :  { %v1309_v25 = vadd.f32 %v1308_v63, %v1307_v6  ;;  %v1005_v50 = vmul.f32 %v1705_v8, %v1001_v35 }
 0x1bc   :  { %v1311_v29 = vadd.f32 %v1310_v26, %v1309_v25 }
 0x1be   :  { %v1313_v5 = vadd.f32 %v1312_v59, %v1311_v29 }
 0x1c0   :  { %v1315_v36 = vadd.f32 %v1314_v42, %v1313_v5 }
 0x1c2   :  { %v1317_v10 = vadd.f32 %v1316_v62, %v1315_v36 }
 0x1c4   :  { %v1319_v38 = vadd.f32 %v1318_v58, %v1317_v10 }
 0x1c6   :  { %v1321_v0 = vadd.f32 %v1320_v17, %v1319_v38 }
 0x1c8   :  { %v1323_v52 = vadd.f32 %v1322_v14, %v1321_v0 }
 0x1ca   :  { %v1325_v48 = vadd.f32 %v1324_v11, %v1323_v52 }
 0x1cc   :  { %v1327_v33 = vadd.f32 %v1326_v60, %v1325_v48 }
 0x1ce   :  { %v1328_v46 = vrot.slane %v1327_v33, 4 }
 0x1d0   :  { %v1329_v18 = vadd.f32 %v1328_v46, %v1327_v33 }
 0x1d2   :  { %v1330_v30 = vrot.slane %v1329_v18, 2 }
 0x1d4   :  { %v1331_v57 = vadd.f32 %v1330_v30, %v1329_v18 }
 0x1d6   :  { %v1332_v27 = vrot.slane %v1331_v57, 1 }
 0x1d8   :  { %v1333_v28 = vadd.f32 %v1332_v27, %v1331_v57 }
 0x1da   :  { %v1334_v3 = vadd.f32 %v1333_v28, %v1005_v50 }
 0x1dc   :  { %1335 = vst.msk [vmem:[#allocation3] sm:$0x1] %vm20_vm0, %v1334_v3 }
 0x1e3   :  { %v1342_v20 = vld [vmem:[#allocation3] sm:$0x1] }
 0x1e4   :  { %1706 = vlog2.f32 %v1342_v20 }
 0x1ea   :  { %v1707_v4 = vpop.eup %1706 }
 0x1eb   :  { %v1344_v12 = vmul.f32 0.6931472, %v1707_v4 }
 0x1ed   :  { %v1345_v13 = vadd.f32 %v1344_v12, %v1341_v31 }
 0x1ef   :  { %v1346_v56 = vsub.f32 %v1340_v32, %v1345_v13 }
 0x1f1   :  { %1347 = vst.msk [vmem:[#allocation5] sm:$0x1] %vm20_vm0, %v1346_v56 }
 0x1f2   :  { %1358 = dma.vmem_to_hbm [thread:$0]  %s1354_s24, 16, %s1356_s27, [#allocation6]  }
 0x1f3   :  { %1732 = dma.done.wait [#allocation6], 16  }
 0x1f4   :  { %1733 = vsyncadd [#allocation6], 4294967280 }
 0x1f5   :  { %1363 = vsyncpa [#allocation6], 1 }

</bundles_post_ra>
